<compile_context>
chip_gen: v7x
topology: tpu7x:2x2x1
jax: 0.10.0
libtpu: 0.0.40
codegen_flags: <defaults>
</compile_context>

<pallas_src>
import functools

import jax
import jax.numpy as jnp
from jax import lax
from jax.experimental import pallas as pl
from jax.experimental.pallas import tpu as pltpu

_EPS = 1e-5


# ----------------------------------------------------------------------------
# Pallas kernel: implicit-GEMM conv (+ fused bias + ReLU) on one (image, H-tile)
# block.  x_ref holds the whole padded image (resident in VMEM per batch index);
# the patch is built from VMEM slices (one slab load per kh, static kw windows),
# flattened ONCE, and fed to a single MXU contraction with K = k*k*Cin.
# ----------------------------------------------------------------------------
def _mobileone_kernel(x_ref, w_ref, b_ref, o_ref, *, k, tile_h, wo):
    # x_ref: (Hp, Wp, Cin)          bf16  (full padded image, batch dim squeezed)
    # w_ref: (k*k*Cin, Coutp)       bf16  (all branches folded + flattened)
    # b_ref: (1, Coutp)             f32
    # o_ref: (tile_h*Wo, Coutp)     out dtype
    j = pl.program_id(1)
    h0 = pl.multiple_of(j * tile_h, tile_h)      # first output row of this tile

    taps = []
    for kh in range(k):
        # one sliced load per kh; the k windows along W are static slices of it
        slab = x_ref[pl.ds(h0 + kh, tile_h), :, :]           # (tile_h, Wp, Cin)
        for kw in range(k):
            taps.append(slab[:, kw:kw + wo, :])              # (tile_h, Wo, Cin)

    patch = jnp.concatenate(taps, axis=-1)                   # (tile_h, Wo, k*k*Cin)
    patch = patch.reshape(tile_h * wo, patch.shape[-1])      # single flatten

    # one MXU contraction, K = k*k*Cin, accumulate in f32
    acc = jnp.dot(patch, w_ref[...], preferred_element_type=jnp.float32)
    out = jnp.maximum(acc + b_ref[...], 0.0)                 # fused bias + ReLU
    o_ref[...] = out.astype(o_ref.dtype)


# ----------------------------------------------------------------------------
# NHWC-native wrapper (no layout transposes): pad + cast, pallas_call.
# ----------------------------------------------------------------------------
def mobileone_forward_nhwc(x_nhwc, fused, *, kernel_size, stride, padding,
                           groups=1, tile_h=None, out_dtype=None):
    assert groups == 1   # TODO(synk): grouped / depthwise conv not implemented
    assert stride == 1   # TODO(synk): stride > 1 (strided window slicing) not implemented

    k = kernel_size
    N, H, W, Cin = x_nhwc.shape
    w_flat, bias, cout = fused["w"], fused["bias"], fused["cout"]
    coutp = w_flat.shape[-1]
    assert w_flat.shape[0] == k * k * Cin
    Hp, Wp = H + 2 * padding, W + 2 * padding
    Ho, Wo = Hp - k + 1, Wp - k + 1
    out_dtype = out_dtype or x_nhwc.dtype

    # Spatial zero padding + bf16 matmul operands (one fused producer pass).
    # TODO(synk): fold the zero-padding into the kernel (halo-tiled VMEM scratch)
    #             to remove this extra HBM pass and to keep VMEM bounded for very
    #             large feature maps on v7x (64 MiB VMEM).
    xp = jnp.pad(x_nhwc.astype(jnp.bfloat16),
                 ((0, 0), (padding, padding), (padding, padding), (0, 0)))

    # Output-row tile along H: as many rows per grid step as fits a modest VMEM
    # working-set budget (amortizes the ~0.35us per-step overhead).
    def _step_bytes(th):
        m = th * Wo
        return (m * (k * k * Cin) * 2            # bf16 patch
                + m * coutp * 4                  # f32 matmul result
                + 2 * m * coutp * jnp.dtype(out_dtype).itemsize)  # dbl-buffered out
    if tile_h is None:
        budget = 4 * 1024 * 1024
        divs = [d for d in range(1, Ho + 1) if Ho % d == 0]
        ok = [d for d in divs if (d * Wo) % 8 == 0 or d == Ho]
        fit = [d for d in ok if _step_bytes(d) <= budget]
        tile_h = max(fit) if fit else min(ok)
    assert Ho % tile_h == 0          # TODO(synk): cdiv grid + masked last tile
    assert (tile_h * Wo) % 8 == 0 or tile_h == Ho

    kern = functools.partial(_mobileone_kernel, k=k, tile_h=tile_h, wo=Wo)

    flops = 2 * N * Ho * Wo * (k * k * Cin) * cout
    bytes_accessed = (xp.size * 2 + w_flat.size * 2 + bias.size * 4
                      + N * Ho * Wo * coutp * jnp.dtype(out_dtype).itemsize)

    out = pl.pallas_call(
        kern,
        out_shape=jax.ShapeDtypeStruct((N, Ho * Wo, coutp), out_dtype),
        grid_spec=pltpu.PrefetchScalarGridSpec(
            num_scalar_prefetch=0,
            grid=(N, Ho // tile_h),
            in_specs=[
                # Whole padded image; block index changes only with n, so it is
                # DMA'd once per image and stays resident across the H tiles.
                pl.BlockSpec((None, Hp, Wp, Cin), lambda n, j: (n, 0, 0, 0)),
                pl.BlockSpec((k * k * Cin, coutp), lambda n, j: (0, 0)),
                pl.BlockSpec((1, coutp), lambda n, j: (0, 0)),
            ],
            out_specs=pl.BlockSpec((None, tile_h * Wo, coutp),
                                   lambda n, j: (n, j, 0)),
        ),
        compiler_params=pltpu.CompilerParams(
            # Both axes independent -> H tiles can also shard across the 2 TCs
            # on v7x even when N == 1.
            dimension_semantics=("parallel", "parallel"),
            vmem_limit_bytes=32 * 1024 * 1024),
        cost_estimate=pl.CostEstimate(flops=flops, transcendentals=0,
                                      bytes_accessed=bytes_accessed),
    )(xp, w_flat, bias)

    out = out.reshape(N, Ho, Wo, coutp)          # free bitcast
    if coutp != cout:
        out = out[..., :cout]                    # only when lane-dense padding used
    return out


# NCHW shim for parity with the PyTorch module interface.  An NHWC-native model
# should call mobileone_forward_nhwc directly and skip both transposes.
def mobileone_forward(x_nchw, fused, **kwargs):
    x_nhwc = jnp.transpose(x_nchw, (0, 2, 3, 1))
    y = mobileone_forward_nhwc(x_nhwc, fused, **kwargs)
    return jnp.transpose(y, (0, 3, 1, 2))


# ----------------------------------------------------------------------------
# Deterministic parameter init (shapes follow MobileOneBlock.__init__)
# ----------------------------------------------------------------------------
def _bn_params(key, c):
    k1, k2, k3, k4 = jax.random.split(key, 4)
    gamma = jax.random.uniform(k1, (c,), jnp.float32, 0.5, 1.5)
    beta = 0.1 * jax.random.normal(k2, (c,), jnp.float32)
    mean = 0.1 * jax.random.normal(k3, (c,), jnp.float32)
    var = jax.random.uniform(k4, (c,), jnp.float32, 0.5, 1.5)
    return gamma, beta, mean, var


def init_raw_params(key, in_c, out_c, kernel_size, groups, num_branches):
    has_scale = kernel_size > 1
    has_skip = (out_c == in_c)          # and stride == 1 (checked by caller)
    keys = list(jax.random.split(key, 2 * num_branches + 4))
    ki = iter(keys)
    branches = []
    for _ in range(num_branches):
        w = 0.2 * jax.random.normal(next(ki),
                                    (out_c, in_c // groups, kernel_size, kernel_size),
                                    jnp.float32)
        branches.append((w, _bn_params(next(ki), out_c)))
    conv_1x1 = None
    if has_scale:
        w1 = 0.2 * jax.random.normal(next(ki), (out_c, in_c // groups, 1, 1),
                                     jnp.float32)
        conv_1x1 = (w1, _bn_params(next(ki), out_c))
    skip_bn = _bn_params(next(ki), in_c) if has_skip else None
    return {"branches": branches, "conv_1x1": conv_1x1, "skip_bn": skip_bn}


def fuse_params(raw, in_c, out_c, kernel_size, padding):
    """Fold every branch (conv+BN, 1x1+BN, skip-BN) into ONE KxK kernel + bias.

    Same math as the module's reparameterize()/_get_kernel_bias() (eval-mode BN).
    The weight is flattened to (k*k*Cin, Coutp) in bf16 so the kernel can do a
    single MXU contraction; the bias stays f32.
    """
    def fuse_conv_bn(w, bnp):
        g, b, m, v = bnp
        t = g / jnp.sqrt(v + _EPS)
        return w * t[:, None, None, None], b - m * t

    k = kernel_size
    c = k // 2
    w_oihw = jnp.zeros((out_c, in_c, k, k), jnp.float32)
    bias = jnp.zeros((out_c,), jnp.float32)

    for w, bnp in raw["branches"]:
        wf, bf = fuse_conv_bn(w, bnp)
        w_oihw = w_oihw + wf
        bias = bias + bf

    if raw["conv_1x1"] is not None:
        assert padding == k // 2            # center-tap folding only valid then
        w1f, b1f = fuse_conv_bn(*raw["conv_1x1"])         # (out_c, in_c, 1, 1)
        w_oihw = w_oihw.at[:, :, c, c].add(w1f[:, :, 0, 0])
        bias = bias + b1f

    if raw["skip_bn"] is not None:
        assert padding == k // 2 and out_c == in_c
        g, b, m, v = raw["skip_bn"]
        t = g / jnp.sqrt(v + _EPS)
        w_oihw = w_oihw.at[:, :, c, c].add(jnp.diag(t))   # identity * t (groups=1)
        bias = bias + (b - m * t)

    # (kh, kw, Cin, Cout) -> flattened contraction axis ordered (kh, kw, c),
    # matching the kernel's patch construction.
    w_flat = jnp.transpose(w_oihw, (2, 3, 1, 0)).reshape(k * k * in_c, out_c)

    # Adaptive Cout padding: lane-dense (multiple of 128) only if the extra HBM
    # write traffic is <= 12.5%; otherwise store at exact width (masked vst) to
    # avoid e.g. 32x write amplification + a crop pass when Cout is narrow.
    coutp_dense = -(-out_c // 128) * 128
    coutp = coutp_dense if coutp_dense * 8 <= out_c * 9 else out_c
    w_flat = jnp.pad(w_flat, ((0, 0), (0, coutp - out_c)))
    bias_p = jnp.pad(bias, (0, coutp - out_c)).reshape(1, coutp)
    return {"w": w_flat.astype(jnp.bfloat16),
            "bias": bias_p.astype(jnp.float32),
            "cout": out_c}


# ----------------------------------------------------------------------------
# Pure-JAX reference (matches the PyTorch forward, eval-mode BN)
# ----------------------------------------------------------------------------
def ref_forward(x, raw, *, kernel_size, stride, padding):
    def bn(y, p):
        g, b, m, v = p
        inv = g / jnp.sqrt(v + _EPS)
        return (y - m[None, :, None, None]) * inv[None, :, None, None] \
            + b[None, :, None, None]

    def conv(y, w, s, p):
        return lax.conv_general_dilated(
            y, w, (s, s), [(p, p), (p, p)],
            dimension_numbers=("NCHW", "OIHW", "NCHW"),
            precision=lax.Precision.HIGHEST)

    identity_out = bn(x, raw["skip_bn"]) if raw["skip_bn"] is not None else 0.0
    scale_out = 0.0
    if raw["conv_1x1"] is not None:
        w1, bn1 = raw["conv_1x1"]
        scale_out = bn(conv(x, w1, stride, 0), bn1)
    out = scale_out + identity_out
    for w, bnp in raw["branches"]:
        out = out + bn(conv(x, w, stride, padding), bnp)
    return jnp.maximum(out, 0.0)


if __name__ == "__main__":
    key = jax.random.PRNGKey(0)
    kx, kp = jax.random.split(key)

    # MobileOneBlock(in=4, out=4, kernel_size=3, stride=1, padding=1,
    #                groups=1, num_conv_branches=2)
    N, C, H, W = 2, 4, 16, 16
    in_c = out_c = C
    kernel_size, stride, padding, groups, num_branches = 3, 1, 1, 1, 2

    x = jax.random.normal(kx, (N, C, H, W), jnp.float32)      # NCHW, like PyTorch

    raw = init_raw_params(kp, in_c, out_c, kernel_size, groups, num_branches)
    if not (out_c == in_c and stride == 1):
        raw["skip_bn"] = None
    fused = fuse_params(raw, in_c, out_c, kernel_size, padding)

    y_ref = ref_forward(x, raw, kernel_size=kernel_size, stride=stride,
                        padding=padding)

    # 1) default VMEM-aware tile (whole 16x16 image per grid step here)
    y = mobileone_forward(x, fused, kernel_size=kernel_size, stride=stride,
                          padding=padding, groups=groups)
    y = jax.block_until_ready(y)
    assert y.shape == (N, out_c, H, W)
    # bf16 matmul operands -> slightly looser tolerance than pure f32.
    assert jnp.allclose(y, y_ref, rtol=2e-2, atol=5e-2), \
        float(jnp.max(jnp.abs(y - y_ref)))

    # 2) explicit tile_h=8 -> 2 H-tiles per image, exercising the sliding-window
    #    (non-zero h0) path of the kernel.
    y2 = mobileone_forward(x, fused, kernel_size=kernel_size, stride=stride,
                           padding=padding, groups=groups, tile_h=8)
    y2 = jax.block_until_ready(y2)
    assert jnp.allclose(y2, y_ref, rtol=2e-2, atol=5e-2), \
        float(jnp.max(jnp.abs(y2 - y_ref)))

    print("KERNEL_OK")
</pallas_src>

<mosaic_0001>
module attributes {stable_mosaic.version = 11 : i64} {
  func.func @_mobileone_kernel(%arg0: i32, %arg1: i32, %arg2: memref<1x18x18x4xbf16, #tpu.memory_space<vmem>>, %arg3: memref<36x4xbf16, #tpu.memory_space<vmem>>, %arg4: memref<1x4xf32, #tpu.memory_space<vmem>>, %arg5: memref<1x256x4xf32, #tpu.memory_space<vmem>>) attributes {dimension_semantics = [#tpu.dimension_semantics<parallel>, #tpu.dimension_semantics<parallel>], iteration_bounds = array<i64: 2, 1>, scalar_prefetch = 0 : i64, scratch_operands = 0 : i64, tpu.core_type = #tpu.core_type<tc>, window_params = [{transform_indices = @transform_0, window_bounds = array<i64: 1, 18, 18, 4>}, {pipeline_mode = #tpu.pipeline_mode<synchronous>, transform_indices = @transform_1, window_bounds = array<i64: 36, 4>}, {pipeline_mode = #tpu.pipeline_mode<synchronous>, transform_indices = @transform_2, window_bounds = array<i64: 1, 4>}, {transform_indices = @transform_3, window_bounds = array<i64: 1, 256, 4>}]} {
    %c16_i32 = arith.constant 16 : i32
    %0 = arith.muli %arg1, %c16_i32 : i32
    %1 = tpu.assume_multiple %0, 16 : i32
    %c0_i32 = arith.constant 0 : i32
    %2 = arith.addi %1, %c0_i32 : i32
    %c0 = arith.constant 0 : index
    %3 = arith.index_cast %2 : i32 to index
    %c0_0 = arith.constant 0 : index
    %c0_1 = arith.constant 0 : index
    %4 = vector.load %arg2[%c0, %3, %c0_0, %c0_1] : memref<1x18x18x4xbf16, #tpu.memory_space<vmem>>, vector<1x16x18x4xbf16>
    %5 = vector.shape_cast %4 : vector<1x16x18x4xbf16> to vector<16x18x4xbf16>
    %6 = vector.extract_strided_slice %5 {offsets = [0, 0, 0], sizes = [16, 16, 4], strides = [1, 1, 1]} : vector<16x18x4xbf16> to vector<16x16x4xbf16>
    %7 = vector.extract_strided_slice %5 {offsets = [0, 1, 0], sizes = [16, 16, 4], strides = [1, 1, 1]} : vector<16x18x4xbf16> to vector<16x16x4xbf16>
    %8 = vector.extract_strided_slice %5 {offsets = [0, 2, 0], sizes = [16, 16, 4], strides = [1, 1, 1]} : vector<16x18x4xbf16> to vector<16x16x4xbf16>
    %c1_i32 = arith.constant 1 : i32
    %9 = arith.addi %1, %c1_i32 : i32
    %c0_2 = arith.constant 0 : index
    %10 = arith.index_cast %9 : i32 to index
    %c0_3 = arith.constant 0 : index
    %c0_4 = arith.constant 0 : index
    %11 = vector.load %arg2[%c0_2, %10, %c0_3, %c0_4] : memref<1x18x18x4xbf16, #tpu.memory_space<vmem>>, vector<1x16x18x4xbf16>
    %12 = vector.shape_cast %11 : vector<1x16x18x4xbf16> to vector<16x18x4xbf16>
    %13 = vector.extract_strided_slice %12 {offsets = [0, 0, 0], sizes = [16, 16, 4], strides = [1, 1, 1]} : vector<16x18x4xbf16> to vector<16x16x4xbf16>
    %14 = vector.extract_strided_slice %12 {offsets = [0, 1, 0], sizes = [16, 16, 4], strides = [1, 1, 1]} : vector<16x18x4xbf16> to vector<16x16x4xbf16>
    %15 = vector.extract_strided_slice %12 {offsets = [0, 2, 0], sizes = [16, 16, 4], strides = [1, 1, 1]} : vector<16x18x4xbf16> to vector<16x16x4xbf16>
    %c2_i32 = arith.constant 2 : i32
    %16 = arith.addi %1, %c2_i32 : i32
    %c0_5 = arith.constant 0 : index
    %17 = arith.index_cast %16 : i32 to index
    %c0_6 = arith.constant 0 : index
    %c0_7 = arith.constant 0 : index
    %18 = vector.load %arg2[%c0_5, %17, %c0_6, %c0_7] : memref<1x18x18x4xbf16, #tpu.memory_space<vmem>>, vector<1x16x18x4xbf16>
    %19 = vector.shape_cast %18 : vector<1x16x18x4xbf16> to vector<16x18x4xbf16>
    %20 = vector.extract_strided_slice %19 {offsets = [0, 0, 0], sizes = [16, 16, 4], strides = [1, 1, 1]} : vector<16x18x4xbf16> to vector<16x16x4xbf16>
    %21 = vector.extract_strided_slice %19 {offsets = [0, 1, 0], sizes = [16, 16, 4], strides = [1, 1, 1]} : vector<16x18x4xbf16> to vector<16x16x4xbf16>
    %22 = vector.extract_strided_slice %19 {offsets = [0, 2, 0], sizes = [16, 16, 4], strides = [1, 1, 1]} : vector<16x18x4xbf16> to vector<16x16x4xbf16>
    %23 = tpu.concatenate %6, %7, %8, %13, %14, %15, %20, %21, %22 in 2 : vector<16x16x4xbf16>, vector<16x16x4xbf16>, vector<16x16x4xbf16>, vector<16x16x4xbf16>, vector<16x16x4xbf16>, vector<16x16x4xbf16>, vector<16x16x4xbf16>, vector<16x16x4xbf16>, vector<16x16x4xbf16> -> vector<16x16x36xbf16>
    %24 = vector.shape_cast %23 : vector<16x16x36xbf16> to vector<256x36xbf16>
    %c0_8 = arith.constant 0 : index
    %c0_9 = arith.constant 0 : index
    %25 = vector.load %arg3[%c0_8, %c0_9] : memref<36x4xbf16, #tpu.memory_space<vmem>>, vector<36x4xbf16>
    %cst = arith.constant dense<0.000000e+00> : vector<256x4xf32>
    %26 = tpu.matmul %24, %25, %cst {dimension_numbers = #tpu.dot_dimension_numbers<[1], [0], [0], [1], [0, 0, 1, 1], [], []>} : vector<256x36xbf16>, vector<36x4xbf16>, vector<256x4xf32> -> vector<256x4xf32>
    %c0_10 = arith.constant 0 : index
    %c0_11 = arith.constant 0 : index
    %27 = vector.load %arg4[%c0_10, %c0_11] : memref<1x4xf32, #tpu.memory_space<vmem>>, vector<1x4xf32>
    %28 = vector.broadcast %27 : vector<1x4xf32> to vector<256x4xf32>
    %29 = arith.addf %26, %28 : vector<256x4xf32>
    %cst_12 = arith.constant 0.000000e+00 : f32
    %30 = vector.broadcast %cst_12 : f32 to vector<256x4xf32>
    %31 = arith.maximumf %29, %30 : vector<256x4xf32>
    %c0_13 = arith.constant 0 : index
    %c0_14 = arith.constant 0 : index
    %c0_15 = arith.constant 0 : index
    %32 = vector.load %arg5[%c0_13, %c0_14, %c0_15] : memref<1x256x4xf32, #tpu.memory_space<vmem>>, vector<1x256x4xf32>
    %33 = vector.shape_cast %32 : vector<1x256x4xf32> to vector<256x4xf32>
    %34 = vector.shape_cast %31 : vector<256x4xf32> to vector<1x256x4xf32>
    tpu.vector_store %arg5[%c0_13, %c0_14, %c0_15], %34 {strides = array<i32>} : memref<1x256x4xf32, #tpu.memory_space<vmem>>, vector<1x256x4xf32>,
    return
  }
  func.func @transform_0(%arg0: i32, %arg1: i32) -> (i32, i32, i32, i32) {
    %c0_i32 = arith.constant 0 : i32
    %c0_i32_0 = arith.constant 0 : i32
    %c0_i32_1 = arith.constant 0 : i32
    %c0_i32_2 = arith.constant 0 : i32
    return %arg0, %c0_i32, %c0_i32_0, %c0_i32_1 : i32, i32, i32, i32
  }
  func.func @transform_1(%arg0: i32, %arg1: i32) -> (i32, i32) {
    %c0_i32 = arith.constant 0 : i32
    %c0_i32_0 = arith.constant 0 : i32
    %c0_i32_1 = arith.constant 0 : i32
    return %c0_i32, %c0_i32_0 : i32, i32
  }
  func.func @transform_2(%arg0: i32, %arg1: i32) -> (i32, i32) {
    %c0_i32 = arith.constant 0 : i32
    %c0_i32_0 = arith.constant 0 : i32
    %c0_i32_1 = arith.constant 0 : i32
    return %c0_i32, %c0_i32_0 : i32, i32
  }
  func.func @transform_3(%arg0: i32, %arg1: i32) -> (i32, i32, i32) {
    %c0_i32 = arith.constant 0 : i32
    %c0_i32_0 = arith.constant 0 : i32
    return %arg0, %arg1, %c0_i32 : i32, i32, i32
  }
}

</mosaic_0001>

<bundles_post_ra>
// kernel: tpu_custom_call.1
= control target key start
LH: loop header
LB: loop body
LE: loop exit
PB: predicated region body
PF: predicated region fallthrough
CT: control target
= control target key end

     0   :  { %s2841_s12 = smov 0   ;;  %s2843_s13 = smov 0   ;;  %s4017_s0 = inlined_call_operand.vmem [shape: bf16[2,18,18,4], index: 0, kind: input, shape index: {}]   ;;  %s4018_s1 = inlined_call_operand.vmem [shape: bf16[36,4], index: 1, kind: input, shape index: {}]   ;;  %s4019_s2 = inlined_call_operand.vmem [shape: f32[1,4], index: 2, kind: input, shape index: {}]   ;;  %s4020_s3 = inlined_call_operand.vmem [shape: f32[2,256,4], index: 3, kind: output, shape index: {}]  }
   0x1   :  { %s2845_s14 = smov 0  }
   0x2 LB: > { %s25_s15 = sadd.s32 1, %s2807_s13  ;;  %p2361_p0 = scmp.ge.s32.totalorder %s2811_s14, 1  ;;  %s2811_s14 = sphi %s2845_s14, %s13_s14   ;;  %s2807_s13 = sphi %s2843_s13, %s4022_s13   ;;  %s2803_s12 = sphi %s2841_s12, %s4021_s12  }
   0x3   : > { %p27_p1 = scmp.ge.s32.totalorder %s25_s15, 2  ;;  %p151_p2 = scmp.lt.s32.totalorder %s2811_s14, 3 }
   0x5   : > { %s4024_s15 = smov (%p27_p1, %s25_s15), 0  ;;  %p152_p3 = pnand %p2361_p0, %p151_p2 }
   0x6   : > { %p179_p4 = scmp.lt.s32.totalorder (!%p152_p3), %s2803_s12, 1  ;;  %vm704_vm0 = vcmask (!%p152_p3), 1046528   ;;  %s2813_s20 = smov (!%p152_p3), 12   ;;  %vm479_vm1 = vsmask.f32 (!%p152_p3), 7424  ;;  %vm2037_vm2 = vcmask (!%p152_p3), 1041408  }
   0x7   : > { %155 = sbr.rel (%p152_p3) target bundleno = 608 (0x260), region = 32  ;;  %s2814_s21 = smov (!%p152_p3), 8   ;;  %vm1713_vm3 = vcmask (!%p152_p3), 31744   ;;  %vm1746_vm4 = vcmask (!%p152_p3), 64512   ;;  %vm1779_vm5 = vcmask (!%p152_p3), 97280   ;;  %vm1812_vm6 = vcmask (!%p152_p3), 130048  }
   0x8   : > { %s2815_s22 = smov (!%p152_p3), 4   ;;  %s2816_s23 = smov (!%p152_p3), 16   ;;  %vm1845_vm7 = vcmask (!%p152_p3), 162816   ;;  %vm1878_vm8 = vcmask (!%p152_p3), 195584   ;;  %vm1911_vm9 = vcmask (!%p152_p3), 228352   ;;  %vm1944_vm10 = vcmask (!%p152_p3), 261120  }
   0x9   : > { %s2817_s24 = smov (!%p152_p3), 20   ;;  %s2818_s25 = smov (!%p152_p3), 24   ;;  %vm2004_vm11 = vcmask (!%p152_p3), 293888  }
   0xa   : > { %s2819_s26 = smov (!%p152_p3), 28   ;;  %s2820_s27 = smov (!%p152_p3), 32  }
   0xe   : > { %s4026_s12 = smov (!%p179_p4, %s2803_s12), 1 }
   0xf   : > { %s2645_s16 = smul.u32 216, %s4026_s12  ;;  %s2579_s9 = sshll.u32 %s4026_s12, 8 }
  0x11   : > { %s2865_s19 = scalar_lea.vmem %s4017_s0, %s2645_s16  ;;  %s3911_s16 = scalar_lea.vmem %s4020_s3, %s2579_s9 }
  0x12   : > { %v2868_v0 = vld [vmem:[%s2865_s19 + $0x6c] sm:$0xff]   ;;  %v2878_v2 = vld [vmem:[%s2865_s19 + $0x60] sm:$0xff]   ;;  %v2681_v3 = vld [vmem:[%s2865_s19 + $0x68] ss:$0 sps:$4 sm:$0x11]  }
  0x13   : > { %v2871_v1 = vld [vmem:[%s2865_s19 + $0xc] sm:$0xff]   ;;  %881 = vrot.lane.b32.xlu1 %v2868_v0, %s2813_s20  ;;  %v2682_v4 = vld [vmem:[%s2865_s19] sm:$0xff]   ;;  %v1042_v5 = vshrl.u32 %v2868_v0, 16  ;;  %v729_v6 = vrot.slane %v2878_v2, 1  ;;  %v730_v7 = vrot.slane %v2681_v3, 1  ;;  %v2897_v36 = vld [vmem:[%s2865_s19 + $0x78] sm:$0xff]  }
  0x14   : > { %865 = vrot.lane.b32.xlu0 %v2871_v1, %s2813_s20  ;;  %v2683_v8 = vld [vmem:[%s2865_s19 + $0x8] ss:$0 sps:$4 sm:$0x11]   ;;  %v2684_v9 = vld [vmem:[%s2865_s19 + $0x6c] sm:$0xff]   ;;  %v705_v10 = vrot.slane %v2682_v4, 1  ;;  %v481_v22 = vshrl.u32 %v2682_v4, 16 }
  0x15   : > { %v2686_v11 = vld [vmem:[%s2865_s19 + $0xc] sm:$0xff]   ;;  %v731_v12 = vsel %vm704_vm0, %v729_v6, %v730_v7  ;;  %v706_v13 = vrot.slane %v2683_v8, 1  ;;  %v2685_v14 = vld [vmem:[%s2865_s19 + $0x74] ss:$0 sps:$4 sm:$0x11]   ;;  %v732_v15 = vrot.slane %v2684_v9, 1 }
  0x16   : > { %v708_v16 = vrot.slane %v2686_v11, 1  ;;  %v733_v18 = vrot.slane %v2685_v14, 1  ;;  %v2687_v19 = vld [vmem:[%s2865_s19 + $0x14] ss:$0 sps:$4 sm:$0x11]   ;;  %v493_v20 = vshrl.u32 %v2686_v11, 16 }
  0x17   : > { %769 = vrot.lane.b32.xlu1 %v731_v12, %s2814_s21  ;;  %v707_v17 = vsel %vm704_vm0, %v705_v10, %v706_v13  ;;  %v495_v21 = vshll.u32 %v2686_v11, 16  ;;  %v483_v23 = vshll.u32 %v2682_v4, 16  ;;  %v709_v25 = vrot.slane %v2687_v19, 1  ;;  %v2690_v44 = vld [vmem:[%s2865_s19 + $0x74] ss:$0 sps:$4 sm:$0x11]  }
  0x18   : > { %753 = vrot.lane.b32.xlu0 %v707_v17, %s2814_s21  ;;  %v734_v24 = vsel %vm704_vm0, %v732_v15, %v733_v18  ;;  %v500_v26 = vshll.u32 %v2687_v19, 16  ;;  %v488_v27 = vshll.u32 %v2683_v8, 16  ;;  %v589_v30 = vshrl.u32 %v2684_v9, 16  ;;  %v2691_v49 = vld [vmem:[%s2865_s19 + $0x14] ss:$0 sps:$4 sm:$0x11]  }
  0x19   : > { %v497_v28 = vrot.slane %v495_v21, 1  ;;  %v485_v29 = vrot.slane %v483_v23, 1  ;;  %v591_v31 = vshll.u32 %v2684_v9, 16  ;;  %v710_v32 = vsel %vm704_vm0, %v708_v16, %v709_v25  ;;  %v2909_v52 = vld [vmem:[%s2865_s19 + $0x18] sm:$0xff]  }
  0x1a   : > { %v502_v33 = vrot.slane %v500_v26, 1  ;;  %v490_v34 = vrot.slane %v488_v27, 1  ;;  %v596_v35 = vshll.u32 %v2685_v14, 16  ;;  %v577_v40 = vshrl.u32 %v2878_v2, 16  ;;  %v2939_v26 = vld [vmem:[%s2865_s19 + $0x78] sm:$0xff]  }
  0x1b   : > { %771 = vrot.lane.b32.xlu1 %v734_v24, %s2814_s21  ;;  %v498_v37 = vor.u32 %v497_v28, %v493_v20  ;;  %v486_v38 = vor.u32 %v485_v29, %v481_v22  ;;  %v593_v39 = vrot.slane %v591_v31, 1  ;;  %v579_v42 = vshll.u32 %v2878_v2, 16  ;;  %v2692_v58 = vld [vmem:[%s2865_s19 + $0x80] ss:$0 sps:$4 sm:$0x11]  }
  0x1c   : > { %755 = vrot.lane.b32.xlu0 %v710_v32, %s2814_s21  ;;  %v598_v41 = vrot.slane %v596_v35, 1  ;;  %v584_v43 = vshll.u32 %v2681_v3, 16  ;;  %v1044_v48 = vshll.u32 %v2868_v0, 16  ;;  %v1049_v53 = vshll.u32 %v2690_v44, 16  ;;  %v2959_v35 = vld [vmem:[%s2865_s19 + $0x24] sm:$0xff]  }
  0x1d   : > { %v503_v45 = vsel %vm479_vm1, %v498_v37, %v502_v33  ;;  %v491_v46 = vsel %vm479_vm1, %v486_v38, %v490_v34  ;;  %v594_v47 = vor.u32 %v593_v39, %v589_v30  ;;  %v581_v50 = vrot.slane %v579_v42, 1  ;;  %v2693_v62 = vld [vmem:[%s2865_s19 + $0x20] ss:$0 sps:$4 sm:$0x11]   ;;  %v2954_v33 = vld [vmem:[%s2865_s19 + $0x84] sm:$0xff]  }
  0x1e   : > { %v586_v51 = vrot.slane %v584_v43, 1  ;;  %v1046_v55 = vrot.slane %v1044_v48, 1  ;;  %v948_v56 = vshll.u32 %v2871_v1, 16  ;;  %v953_v57 = vshll.u32 %v2691_v49, 16 }
  0x1f   : > { %674 = vrot.lane.b32.xlu1 %v503_v45, %s2815_s22  ;;  %v599_v54 = vsel %vm479_vm1, %v594_v47, %v598_v41  ;;  %v582_v59 = vor.u32 %v581_v50, %v577_v40  ;;  %v946_v60 = vshrl.u32 %v2871_v1, 16  ;;  %v1056_v61 = vshll.u32 %v2897_v36, 16  ;;  %v2951_v32 = vld [vmem:[%s2865_s19 + $0x80] ss:$0 sps:$4 sm:$0x11]   ;;  %v2983_v50 = vld [vmem:[%s2865_s19 + $0x78] sm:$0xff]  }
  0x20   : > { %672 = vrot.lane.b32.xlu0 %v491_v46, %s2815_s22  ;;  %v1051_v63 = vrot.slane %v1049_v53, 1  ;;  %v950_v2 = vrot.slane %v948_v56, 1  ;;  %v955_v4 = vrot.slane %v953_v57, 1  ;;  %v1054_v6 = vshrl.u32 %v2897_v36, 16 }
  0x21   : > { %v587_v3 = vsel %vm479_vm1, %v582_v59, %v586_v51  ;;  %v960_v7 = vshll.u32 %v2909_v52, 16  ;;  %v1047_v8 = vor.u32 %v1046_v55, %v1042_v5  ;;  %v1058_v9 = vrot.slane %v1056_v61, 1  ;;  %v2990_v55 = vld [vmem:[%s2865_s19 + $0x18] sm:$0xff]  }
  0x22   : > { %v1061_v10 = vshll.u32 %v2692_v58, 16  ;;  %v951_v11 = vor.u32 %v950_v2, %v946_v60  ;;  %v958_v12 = vshrl.u32 %v2909_v52, 16  ;;  %v965_v14 = vshll.u32 %v2693_v62, 16 }
  0x23   : > { %690 = vrot.lane.b32.xlu1 %v599_v54, %s2815_s22  ;;  %v962_v13 = vrot.slane %v960_v7, 1  ;;  %v1052_v15 = vsel %vm479_vm1, %v1047_v8, %v1051_v63  ;;  %v1059_v16 = vor.u32 %v1058_v9, %v1054_v6  ;;  %v1193_v21 = vrot.slane %v2868_v0, 1  ;;  %v3000_v63 = vld [vmem:[%s2865_s19 + $0x20] ss:$0 sps:$4 sm:$0x11]  }
  0x24   : > { %688 = vrot.lane.b32.xlu0 %v587_v3, %s2815_s22  ;;  %v1063_v17 = vrot.slane %v1061_v10, 1  ;;  %v956_v5 = vsel %vm479_vm1, %v951_v11, %v955_v4  ;;  %v967_v19 = vrot.slane %v965_v14, 1  ;;  %v1194_v22 = vrot.slane %v2690_v44, 1  ;;  %v2973_v44 = vld [vmem:[%s2865_s19 + $0x8c] ss:$0 sps:$4 sm:$0x11]  }
  0x25   : > { %v963_v18 = vor.u32 %v962_v13, %v958_v12  ;;  %v1169_v24 = vrot.slane %v2871_v1, 1  ;;  %v1170_v25 = vrot.slane %v2691_v49, 1  ;;  %v1196_v28 = vrot.slane %v2897_v36, 1  ;;  %v2948_v1 = vld [vmem:[%s2865_s19 + $0x18] sm:$0xff]  }
  0x26   : > { %v1064_v20 = vsel %vm479_vm1, %v1059_v16, %v1063_v17  ;;  %v1195_v27 = vsel %vm704_vm0, %v1193_v21, %v1194_v22  ;;  %v1197_v0 = vrot.slane %v2692_v58, 1  ;;  %v1172_v30 = vrot.slane %v2909_v52, 1  ;;  %v2980_v49 = vld [vmem:[%s2865_s19 + $0x2c] ss:$0 sps:$4 sm:$0x11]  }
  0x27   : > { %883 = vrot.lane.b32.xlu1 %v2897_v36, %s2813_s20  ;;  %v968_v23 = vsel %vm479_vm1, %v963_v18, %v967_v19  ;;  %v1171_v29 = vsel %vm704_vm0, %v1169_v24, %v1170_v25  ;;  %v1173_v31 = vrot.slane %v2693_v62, 1  ;;  %v1508_v34 = vshll.u32 %v2939_v26, 16  ;;  %v2962_v36 = vld [vmem:[%s2865_s19 + $0x20] ss:$0 sps:$4 sm:$0x11]   ;;  %v3020_v18 = vld [vmem:[%s2865_s19 + $0x84] sm:$0xff]  }
  0x28   : > { %867 = vrot.lane.b32.xlu0 %v2909_v52, %s2813_s20  ;;  %v1198_v37 = vsel %vm704_vm0, %v1196_v28, %v1197_v0  ;;  %v1412_v39 = vshll.u32 %v2948_v1, 16  ;;  %v1506_v40 = vshrl.u32 %v2939_v26, 16  ;;  %v1513_v42 = vshll.u32 %v2951_v32, 16  ;;  %v2997_v62 = vld [vmem:[%s2865_s19 + $0x80] ss:$0 sps:$4 sm:$0x11]  }
  0x29   : > { %v1174_v38 = vsel %vm704_vm0, %v1172_v30, %v1173_v31  ;;  %v1510_v41 = vrot.slane %v1508_v34, 1  ;;  %v1417_v43 = vshll.u32 %v2962_v36, 16  ;;  %v1520_v45 = vshll.u32 %v2954_v33, 16  ;;  %v2707_v28 = vld [vmem:[%s2865_s19 + $0x8c] ss:$0 sps:$4 sm:$0x11]  }
  0x2a   : > { %v1424_v46 = vshll.u32 %v2959_v35, 16  ;;  %v1410_v47 = vshrl.u32 %v2948_v1, 16  ;;  %v1414_v48 = vrot.slane %v1412_v39, 1  ;;  %v1515_v52 = vrot.slane %v1513_v42, 1 }
  0x2b   : > { %1153 = vrot.lane.b32.xlu1 %v1052_v15, %s2816_s23  ;;  %v1511_v51 = vor.u32 %v1510_v41, %v1506_v40  ;;  %v1518_v53 = vshrl.u32 %v2954_v33, 16  ;;  %v1422_v54 = vshrl.u32 %v2959_v35, 16  ;;  %v1419_v56 = vrot.slane %v1417_v43, 1  ;;  %v2709_v31 = vld [vmem:[%s2865_s19 + $0x2c] ss:$0 sps:$4 sm:$0x11]  }
  0x2c   : > { %1137 = vrot.lane.b32.xlu0 %v956_v5, %s2816_s23  ;;  %v1522_v57 = vrot.slane %v1520_v45, 1  ;;  %v1525_v58 = vshll.u32 %v2973_v44, 16  ;;  %v1426_v59 = vrot.slane %v1424_v46, 1  ;;  %v1415_v60 = vor.u32 %v1414_v48, %v1410_v47 }
  0x2d   : > { %v1429_v61 = vshll.u32 %v2980_v49, 16  ;;  %v1516_v2 = vsel %vm479_vm1, %v1511_v51, %v1515_v52  ;;  %v603_v6 = vshll.u32 %v2983_v50, 16  ;;  %v507_v10 = vshll.u32 %v2990_v55, 16 }
  0x2e   : > { %v1523_v3 = vor.u32 %v1522_v57, %v1518_v53  ;;  %v1527_v4 = vrot.slane %v1525_v58, 1  ;;  %v1420_v7 = vsel %vm479_vm1, %v1415_v60, %v1419_v56  ;;  %v1427_v8 = vor.u32 %v1426_v59, %v1422_v54  ;;  %v3059_v58 = vld [vmem:[%s2865_s19 + $0x84] sm:$0xff]  }
  0x2f   : > { %1155 = vrot.lane.b32.xlu1 %v1064_v20, %s2816_s23  ;;  %v1431_v9 = vrot.slane %v1429_v61, 1  ;;  %v1657_v11 = vrot.slane %v2939_v26, 1  ;;  %v1658_v12 = vrot.slane %v2951_v32, 1  ;;  %v608_v13 = vshll.u32 %v2997_v62, 16 }
  0x30   : > { %1139 = vrot.lane.b32.xlu0 %v968_v23, %s2816_s23  ;;  %v512_v14 = vshll.u32 %v3000_v63, 16  ;;  %v1528_v15 = vsel %vm479_vm1, %v1523_v3, %v1527_v4  ;;  %v1633_v16 = vrot.slane %v2948_v1, 1  ;;  %v601_v17 = vshrl.u32 %v2983_v50, 16  ;;  %v3026_v23 = vld [vmem:[%s2865_s19 + $0x24] sm:$0xff]   ;;  %v3076_v4 = vld [vmem:[%s2865_s19 + $0x90] sm:$0xff]  }
  0x31   : > { %v605_v5 = vrot.slane %v603_v6, 1  ;;  %v1432_v19 = vsel %vm479_vm1, %v1427_v8, %v1431_v9  ;;  %v1634_v20 = vrot.slane %v2962_v36, 1  ;;  %v505_v21 = vshrl.u32 %v2990_v55, 16 }
  0x32   : > { %v509_v22 = vrot.slane %v507_v10, 1  ;;  %v610_v24 = vrot.slane %v608_v13, 1  ;;  %v514_v25 = vrot.slane %v512_v14, 1  ;;  %v615_v0 = vshll.u32 %v3020_v18, 16  ;;  %v3086_v10 = vld [vmem:[%s2865_s19 + $0x30] sm:$0xff]  }
  0x33   : > { %1233 = vrot.lane.b32.xlu1 %v1195_v27, %s2817_s24  ;;  %v606_v27 = vor.u32 %v605_v5, %v601_v17  ;;  %v1660_v32 = vrot.slane %v2954_v33, 1  ;;  %v1661_v34 = vrot.slane %v2973_v44, 1  ;;  %v1636_v36 = vrot.slane %v2959_v35, 1 }
  0x34   : > { %1217 = vrot.lane.b32.xlu0 %v1171_v29, %s2817_s24  ;;  %v1635_v29 = vsel %vm704_vm0, %v1633_v16, %v1634_v20  ;;  %v510_v30 = vor.u32 %v509_v22, %v505_v21  ;;  %v613_v39 = vshrl.u32 %v3020_v18, 16  ;;  %v617_v40 = vrot.slane %v615_v0, 1  ;;  %v3096_v16 = vld [vmem:[%s2865_s19 + $0x98] ss:$0 sps:$4 sm:$0x11]  }
  0x35   : > { %v620_v41 = vshll.u32 %v2707_v28, 16  ;;  %v517_v43 = vshrl.u32 %v3026_v23, 16  ;;  %v735_v52 = vrot.slane %v2983_v50, 1  ;;  %v736_v53 = vrot.slane %v2997_v62, 1  ;;  %v3067_v62 = vld [vmem:[%s2865_s19 + $0x24] sm:$0xff]  }
  0x36   : > { %v515_v42 = vsel %vm479_vm1, %v510_v30, %v514_v25  ;;  %v618_v44 = vor.u32 %v617_v40, %v613_v39  ;;  %v711_v56 = vrot.slane %v2990_v55, 1  ;;  %v712_v57 = vrot.slane %v3000_v63, 1  ;;  %v2745_v30 = vld [vmem:[%s4018_s1 + $0x8] sm:$0xff]  }
  0x37   : > { %1235 = vrot.lane.b32.xlu1 %v1198_v37, %s2817_s24  ;;  %v1637_v37 = vrot.slane %v2980_v49, 1  ;;  %v622_v46 = vrot.slane %v620_v41, 1  ;;  %v737_v59 = vsel %vm704_vm0, %v735_v52, %v736_v53  ;;  %v738_v50 = vrot.slane %v3020_v18, 1 }
  0x38   : > { %1219 = vrot.lane.b32.xlu0 %v1174_v38, %s2817_s24  ;;  %v611_v38 = vsel %vm479_vm1, %v606_v27, %v610_v24  ;;  %v739_v60 = vrot.slane %v2707_v28, 1  ;;  %v714_v61 = vrot.slane %v3026_v23, 1  ;;  %v713_v55 = vsel %vm704_vm0, %v711_v56, %v712_v57  ;;  %v3155_v57 = vld [vmem:[%s2865_s19 + $0x9c] sm:$0xff]  }
  0x39   : > { %v1638_v47 = vsel %vm704_vm0, %v1636_v36, %v1637_v37  ;;  %v623_v51 = vsel %vm479_vm1, %v618_v44, %v622_v46  ;;  %v715_v63 = vrot.slane %v2709_v31, 1  ;;  %v1068_v3 = vshll.u32 %v3059_v58, 16 }
  0x3a   : > { %v740_v6 = vsel %vm704_vm0, %v738_v50, %v739_v60  ;;  %v972_v8 = vshll.u32 %v3067_v62, 16  ;;  %v970_v14 = vshrl.u32 %v3067_v62, 16  ;;  %v1080_v17 = vshll.u32 %v3076_v4, 16  ;;  %v3162_v50 = vld [vmem:[%s2865_s19 + $0x3c] sm:$0xff]  }
  0x3b   : > { %1345 = vrot.lane.b32.xlu1 %v2939_v26, %s2818_s25  ;;  %v1659_v26 = vsel %vm704_vm0, %v1657_v11, %v1658_v12  ;;  %v716_v9 = vsel %vm704_vm0, %v714_v61, %v715_v63  ;;  %v1066_v11 = vshrl.u32 %v3059_v58, 16  ;;  %v1070_v12 = vrot.slane %v1068_v3, 1  ;;  %v3169_v63 = vld [vmem:[%s2865_s19 + $0xa4] ss:$0 sps:$4 sm:$0x11]  }
  0x3c   : > { %1329 = vrot.lane.b32.xlu0 %v2948_v1, %s2818_s25  ;;  %v519_v1 = vshll.u32 %v3026_v23, 16  ;;  %v974_v5 = vrot.slane %v972_v8, 1  ;;  %v984_v20 = vshll.u32 %v3086_v10, 16  ;;  %v1078_v21 = vshrl.u32 %v3076_v4, 16 }
  0x3d   : > { %v982_v22 = vshrl.u32 %v3086_v10, 16  ;;  %v1071_v23 = vor.u32 %v1070_v12, %v1066_v11  ;;  %v1082_v25 = vrot.slane %v1080_v17, 1  ;;  %v1199_v39 = vrot.slane %v3059_v58, 1  ;;  %v3182_v11 = vld [vmem:[%s2865_s19 + $0x90] sm:$0xff]  }
  0x3e   : > { %v521_v45 = vrot.slane %v519_v1, 1  ;;  %v975_v27 = vor.u32 %v974_v5, %v970_v14  ;;  %v986_v0 = vrot.slane %v984_v20, 1  ;;  %v1202_v44 = vrot.slane %v3076_v4, 1  ;;  %v3194_v20 = vld [vmem:[%s2865_s19 + $0x98] ss:$0 sps:$4 sm:$0x11]  }
  0x3f   : > { %1347 = vrot.lane.b32.xlu1 %v2954_v33, %s2818_s25  ;;  %v524_v33 = vshll.u32 %v2709_v31, 16  ;;  %v1083_v1 = vor.u32 %v1082_v25, %v1078_v21  ;;  %v1203_v46 = vrot.slane %v3096_v16, 1  ;;  %v1448_v8 = vshll.u32 %v3162_v50, 16 }
  0x40   : > { %1331 = vrot.lane.b32.xlu0 %v2959_v35, %s2818_s25  ;;  %v1662_v35 = vsel %vm704_vm0, %v1660_v32, %v1661_v34  ;;  %v522_v48 = vor.u32 %v521_v45, %v517_v43  ;;  %v987_v36 = vor.u32 %v986_v0, %v982_v22  ;;  %v3131_v45 = vld [vmem:[%s2865_s19 + $0x90] sm:$0xff]   ;;  %v1542_v12 = vshrl.u32 %v3155_v57, 16 }
  0x41   : > { %v526_v49 = vrot.slane %v524_v33, 1  ;;  %v2748_v33 = vld [vmem:[%s4018_s1 + $0x10] ss:$0 sps:$4 sm:$0x33]   ;;  %v1532_v53 = vshll.u32 %v3131_v45, 16  ;;  %v1204_v56 = vsel %vm704_vm0, %v1202_v44, %v1203_v46  ;;  %v1530_v61 = vshrl.u32 %v3131_v45, 16 }
  0x42   : > { %v2039_v52 = vsel %vm2037_vm2, %v2748_v33, 0  ;;  %v1549_v14 = vshll.u32 %v3169_v63, 16  ;;  %v1446_v5 = vshrl.u32 %v3162_v50, 16  ;;  %v627_v25 = vshll.u32 %v3182_v11, 16 }
  0x43   : > { %1617 = vrot.lane.b32.xlu1 %v1516_v2, %s2819_s26  ;;  %v527_v54 = vsel %vm479_vm1, %v522_v48, %v526_v49  ;;  %v3071_v2 = vld [vmem:[%s2865_s19 + $0x8c] ss:$0 sps:$4 sm:$0x11]   ;;  %v1178_v48 = vrot.slane %v3086_v10, 1 }
  0x44   : > { %1601 = vrot.lane.b32.xlu0 %v1420_v7, %s2819_s26  ;;  %v3081_v7 = vld [vmem:[%s2865_s19 + $0x2c] ss:$0 sps:$4 sm:$0x11]   ;;  %v1073_v13 = vshll.u32 %v3071_v2, 16  ;;  %v1200_v40 = vrot.slane %v3071_v2, 1 }
  0x45   : > { %v977_v18 = vshll.u32 %v3081_v7, 16  ;;  %v1176_v43 = vrot.slane %v3081_v7, 1  ;;  %v3231_v44 = vld [vmem:[%s2865_s19 + $0xa4] ss:$0 sps:$4 sm:$0x11]  }
  0x46   : > { %v1075_v24 = vrot.slane %v1073_v13, 1 }
  0x47   : > { %1619 = vrot.lane.b32.xlu1 %v1528_v15, %s2819_s26  ;;  %v2742_v15 = vld [vmem:[%s4018_s1] sm:$0xff]   ;;  %v979_v28 = vrot.slane %v977_v18, 1  ;;  %v1450_v18 = vrot.slane %v1448_v8, 1 }
  0x48   : > { %1603 = vrot.lane.b32.xlu0 %v1432_v19, %s2819_s26  ;;  %2599 = vmatprep.subr.bf16.mxu0 %v2742_v15  ;;  %v3102_v19 = vld [vmem:[%s2865_s19 + $0x38] ss:$0 sps:$4 sm:$0x11]   ;;  %v1076_v31 = vsel %vm479_vm1, %v1071_v23, %v1075_v24  ;;  %v1551_v23 = vrot.slane %v1549_v14, 1 }
  0x49   : > { %2637 = vmatprep.subr.bf16.mxu1 %v2742_v15  ;;  %2600 = vmatpush3.bf16.msra.mxu0 %v2742_v15  ;;  %v980_v34 = vsel %vm479_vm1, %v975_v27, %v979_v28  ;;  %v1179_v49 = vrot.slane %v3102_v19, 1  ;;  %v1451_v27 = vor.u32 %v1450_v18, %v1446_v5  ;;  %v3204_v28 = vld [vmem:[%s2865_s19 + $0x38] ss:$0 sps:$4 sm:$0x11]   ;;  %v741_v18 = vrot.slane %v3182_v11, 1 }
  0x4a   : > { %2640 = vmatpush3.bf16.msra.mxu1 %v2742_v15  ;;  %2601 = vmatprep.subr.bf16.mxu0 %v2745_v30 }
  0x4b   : > { %1697 = vrot.lane.b32.xlu1 %v1659_v26, %s2820_s27  ;;  %v1085_v26 = vshll.u32 %v3096_v16, 16  ;;  %2638 = vmatprep.subr.bf16.mxu1 %v2745_v30 }
  0x4c   : > { %1681 = vrot.lane.b32.xlu0 %v1635_v29, %s2820_s27  ;;  %v989_v29 = vshll.u32 %v3102_v19, 16  ;;  %v3191_v19 = vld [vmem:[%s2865_s19 + $0x30] sm:$0xff]  }
  0x4d   : > { %v1087_v32 = vrot.slane %v1085_v26, 1  ;;  %2602 = vmatpush3.bf16.msra.mxu0 %v2745_v30  ;;  %v531_v0 = vshll.u32 %v3191_v19, 16 }
  0x4e   : > { %v991_v37 = vrot.slane %v989_v29, 1  ;;  %2641 = vmatpush3.bf16.msra.mxu1 %v2745_v30  ;;  %2643 = vmatprep.subr.msk.bf16.mxu0 %vm2037_vm2, %v2748_v33  ;;  %v1663_v30 = vrot.slane %v3131_v45, 1 }
  0x4f   : > { %692 = vrot.lane.b32.xlu1 %v611_v38, %s2815_s22  ;;  %v1088_v38 = vsel %vm479_vm1, %v1083_v1, %v1087_v32  ;;  %2644 = vmatprep.subr.msk.bf16.mxu1 %vm2037_vm2, %v2748_v33  ;;  %v3212_v1 = vld [vmem:[%s2865_s19 + $0x9c] sm:$0xff]   ;;  %v536_v33 = vshll.u32 %v3204_v28, 16 }
  0x50   : > { %676 = vrot.lane.b32.xlu0 %v515_v42, %s2815_s22  ;;  %v992_v41 = vsel %vm479_vm1, %v987_v36, %v991_v37  ;;  %v1175_v42 = vrot.slane %v3067_v62, 1  ;;  %v625_v36 = vshrl.u32 %v3182_v11, 16  ;;  %v632_v37 = vshll.u32 %v3194_v20, 16 }
  0x51   : > { %2604 = vmatpush3.bf16.msra.mxu0 %v2039_v52 }
  0x52   : > { %2642 = vmatpush3.bf16.msra.mxu1 %v2039_v52 }
  0x53   : > { %1699 = vrot.lane.b32.xlu1 %v1662_v35, %s2820_s27  ;;  %v1201_v35 = vsel %vm704_vm0, %v1199_v39, %v1200_v40 }
  0x54   : > { %1683 = vrot.lane.b32.xlu0 %v1638_v47, %s2820_s27  ;;  %v1177_v47 = vsel %vm704_vm0, %v1175_v42, %v1176_v43  ;;  %v529_v42 = vshrl.u32 %v3191_v19, 16 }
  0x57   : > { %694 = vrot.lane.b32.xlu1 %v623_v51, %s2815_s22  ;;  %v3145_v51 = vld [vmem:[%s2865_s19 + $0x30] sm:$0xff]  }
  0x58   : > { %678 = vrot.lane.b32.xlu0 %v527_v54, %s2815_s22  ;;  %v3150_v54 = vld [vmem:[%s2865_s19 + $0x98] ss:$0 sps:$4 sm:$0x11]   ;;  %v1436_v60 = vshll.u32 %v3145_v51, 16  ;;  %v1434_v2 = vshrl.u32 %v3145_v51, 16  ;;  %v1639_v32 = vrot.slane %v3145_v51, 1 }
  0x5a   : > { %v1438_v7 = vrot.slane %v1436_v60, 1  ;;  %v1667_v60 = vrot.slane %v3169_v63, 1 }
  0x5b   : > { %773 = vrot.lane.b32.xlu1 %v737_v59, %s2814_s21  ;;  %v1180_v59 = vsel %vm704_vm0, %v1178_v48, %v1179_v49  ;;  %v639_v49 = vshll.u32 %v3212_v1, 16 }
  0x5c   : > { %757 = vrot.lane.b32.xlu0 %v713_v55, %s2814_s21  ;;  %v1537_v55 = vshll.u32 %v3150_v54, 16  ;;  %v1439_v16 = vor.u32 %v1438_v7, %v1434_v2 }
  0x5f   : > { %775 = vrot.lane.b32.xlu1 %v740_v6, %s2814_s21  ;;  %v3176_v6 = vld [vmem:[%s2865_s19 + $0x44] ss:$0 sps:$4 sm:$0x11]  }
  0x60   : > { %759 = vrot.lane.b32.xlu0 %v716_v9, %s2814_s21  ;;  %v1453_v15 = vshll.u32 %v3176_v6, 16 }
  0x62   : > { %v1455_v24 = vrot.slane %v1453_v15, 1 }
  0x63   : > { %885 = vrot.lane.b32.xlu1 %v3059_v58, %s2813_s20  ;;  %v3158_v58 = vld [vmem:[%s2865_s19 + $0x38] ss:$0 sps:$4 sm:$0x11]  }
  0x64   : > { %869 = vrot.lane.b32.xlu0 %v3067_v62, %s2813_s20  ;;  %v1534_v62 = vrot.slane %v1532_v53, 1  ;;  %v1441_v3 = vshll.u32 %v3158_v58, 16  ;;  %v1456_v43 = vsel %vm479_vm1, %v1451_v27, %v1455_v24  ;;  %v717_v24 = vrot.slane %v3191_v19, 1  ;;  %v3283_v27 = vld [vmem:[%s2865_s19 + $0x9c] sm:$0xff]  }
  0x65   : > { %v3290_v19 = vld [vmem:[%s2865_s19 + $0x3c] sm:$0xff]  }
  0x66   : > { %v1535_v9 = vor.u32 %v1534_v62, %v1530_v61  ;;  %v1443_v17 = vrot.slane %v1441_v3, 1  ;;  %v1642_v61 = vrot.slane %v3162_v50, 1  ;;  %v637_v62 = vshrl.u32 %v3212_v1, 16 }
  0x67   : > { %887 = vrot.lane.b32.xlu1 %v3076_v4, %s2813_s20  ;;  %v1544_v4 = vshll.u32 %v3155_v57, 16  ;;  %v641_v3 = vrot.slane %v639_v49, 1 }
  0x68   : > { %871 = vrot.lane.b32.xlu0 %v3086_v10, %s2813_s20  ;;  %v1539_v10 = vrot.slane %v1537_v55, 1  ;;  %v1444_v26 = vsel %vm479_vm1, %v1439_v16, %v1443_v17 }
  0x69   : > { %v1546_v13 = vrot.slane %v1544_v4, 1  ;;  %v644_v4 = vshll.u32 %v3231_v44, 16 }
  0x6a   : > { %v1540_v21 = vsel %vm479_vm1, %v1535_v9, %v1539_v10 }
  0x6b   : > { %1157 = vrot.lane.b32.xlu1 %v1076_v31, %s2816_s23  ;;  %v1547_v22 = vor.u32 %v1546_v13, %v1542_v12  ;;  %v1664_v31 = vrot.slane %v3150_v54, 1  ;;  %v538_v54 = vrot.slane %v536_v33, 1  ;;  %v642_v12 = vor.u32 %v641_v3, %v637_v62 }
  0x6c   : > { %1141 = vrot.lane.b32.xlu0 %v980_v34, %s2816_s23  ;;  %v1640_v34 = vrot.slane %v3158_v58, 1  ;;  %v646_v13 = vrot.slane %v644_v4, 1 }
  0x6d   : > { %v1552_v40 = vsel %vm479_vm1, %v1547_v22, %v1551_v23 }
  0x6e   : > { %v1641_v52 = vsel %vm704_vm0, %v1639_v32, %v1640_v34  ;;  %v647_v5 = vsel %vm479_vm1, %v642_v12, %v646_v13 }
  0x6f   : > { %1159 = vrot.lane.b32.xlu1 %v1088_v38, %s2816_s23  ;;  %v3220_v38 = vld [vmem:[%s2865_s19 + $0x3c] sm:$0xff]  }
  0x70   : > { %1143 = vrot.lane.b32.xlu0 %v992_v41, %s2816_s23  ;;  %v629_v41 = vrot.slane %v627_v25, 1  ;;  %v541_v63 = vshrl.u32 %v3220_v38, 16  ;;  %v718_v25 = vrot.slane %v3204_v28, 1 }
  0x72   : > { %v630_v48 = vor.u32 %v629_v41, %v625_v36  ;;  %v996_v41 = vshll.u32 %v3290_v19, 16 }
  0x73   : > { %1237 = vrot.lane.b32.xlu1 %v1201_v35, %s2817_s24  ;;  %v634_v35 = vrot.slane %v632_v37, 1  ;;  %v3304_v37 = vld [vmem:[%s2865_s19 + $0xa8] sm:$0xff]  }
  0x74   : > { %1221 = vrot.lane.b32.xlu0 %v1177_v47, %s2817_s24  ;;  %v1665_v47 = vsel %vm704_vm0, %v1663_v30, %v1664_v31  ;;  %v719_v30 = vsel %vm704_vm0, %v717_v24, %v718_v25  ;;  %v720_v31 = vrot.slane %v3220_v38, 1  ;;  %v998_v49 = vrot.slane %v996_v41, 1  ;;  %v3363_v24 = vld [vmem:[%s2865_s19 + $0xa8] sm:$0xff]   ;;  %v3381_v41 = vld [vmem:[%s2865_s19 + $0xb0] ss:$0 sps:$4 sm:$0x11]  }
  0x75   : > { %v635_v2 = vsel %vm479_vm1, %v630_v48, %v634_v35  ;;  %v1090_v35 = vshrl.u32 %v3283_v27, 16  ;;  %v1102_v62 = vshrl.u32 %v3304_v37, 16 }
  0x77   : > { %1239 = vrot.lane.b32.xlu1 %v1204_v56, %s2817_s24  ;;  %v543_v56 = vshll.u32 %v3220_v38, 16 }
  0x78   : > { %1223 = vrot.lane.b32.xlu0 %v1180_v59, %s2817_s24  ;;  %v1666_v59 = vrot.slane %v3155_v57, 1 }
  0x7a   : > { %v1668_v10 = vsel %vm704_vm0, %v1666_v59, %v1667_v60 }
  0x7b   : > { %1349 = vrot.lane.b32.xlu1 %v3131_v45, %s2818_s25  ;;  %v533_v45 = vrot.slane %v531_v0, 1  ;;  %v745_v0 = vrot.slane %v3231_v44, 1 }
  0x7c   : > { %1333 = vrot.lane.b32.xlu0 %v3145_v51, %s2818_s25  ;;  %v3239_v51 = vld [vmem:[%s2865_s19 + $0x44] ss:$0 sps:$4 sm:$0x11]  }
  0x7d   : > { %v534_v53 = vor.u32 %v533_v45, %v529_v42  ;;  %v548_v7 = vshll.u32 %v3239_v51, 16  ;;  %v721_v32 = vrot.slane %v3239_v51, 1  ;;  %v3317_v45 = vld [vmem:[%s2865_s19 + $0x44] ss:$0 sps:$4 sm:$0x11]  }
  0x7e   : > { %v3327_v51 = vld [vmem:[%s2865_s19 + $0xb0] ss:$0 sps:$4 sm:$0x11]  }
  0x7f   : > { %1351 = vrot.lane.b32.xlu1 %v3155_v57, %s2818_s25  ;;  %v539_v8 = vsel %vm479_vm1, %v534_v53, %v538_v54  ;;  %v1643_v57 = vrot.slane %v3176_v6, 1  ;;  %v550_v14 = vrot.slane %v548_v7, 1  ;;  %v722_v42 = vsel %vm704_vm0, %v720_v31, %v721_v32 }
  0x80   : > { %1335 = vrot.lane.b32.xlu0 %v3162_v50, %s2818_s25  ;;  %v545_v50 = vrot.slane %v543_v56, 1  ;;  %v1001_v54 = vshll.u32 %v3317_v45, 16  ;;  %v3334_v56 = vld [vmem:[%s2865_s19 + $0x50] ss:$0 sps:$4 sm:$0x11]   ;;  %v1109_v7 = vshll.u32 %v3327_v51, 16 }
  0x81   : > { %v1644_v16 = vsel %vm704_vm0, %v1642_v61, %v1643_v57  ;;  %v1181_v31 = vrot.slane %v3290_v19, 1  ;;  %v1182_v32 = vrot.slane %v3317_v45, 1 }
  0x82   : > { %v546_v6 = vor.u32 %v545_v50, %v541_v63  ;;  %v1003_v57 = vrot.slane %v1001_v54, 1  ;;  %v3404_v54 = vld [vmem:[%s2865_s19 + $0xb4] sm:$0xff]  }
  0x83   : > { %1621 = vrot.lane.b32.xlu1 %v1540_v21, %s2819_s26  ;;  %v742_v21 = vrot.slane %v3194_v20, 1  ;;  %v744_v20 = vrot.slane %v3212_v1, 1  ;;  %v1092_v1 = vshll.u32 %v3283_v27, 16 }
  0x84   : > { %1605 = vrot.lane.b32.xlu0 %v1444_v26, %s2819_s26  ;;  %v551_v23 = vsel %vm479_vm1, %v546_v6, %v550_v14 }
  0x85   : > { %v3207_v29 = vpop.permute.xlu1 %881  ;;  %v743_v11 = vsel %vm704_vm0, %v741_v18, %v742_v21  ;;  %v746_v36 = vsel %vm704_vm0, %v744_v20, %v745_v0  ;;  %v1094_v44 = vrot.slane %v1092_v1, 1  ;;  %v3375_v1 = vld [vmem:[%s2865_s19 + $0x48] sm:$0xff]  }
  0x86   : > { %v3223_v39 = vpop.permute.xlu0 %865 }
  0x87   : > { %1623 = vrot.lane.b32.xlu1 %v1552_v40, %s2819_s26  ;;  %v3307_v40 = vld [vmem:[%s2865_s19 + $0xa4] ss:$0 sps:$4 sm:$0x11]   ;;  %v1095_v61 = vor.u32 %v1094_v44, %v1090_v35  ;;  %v1183_v35 = vsel %vm704_vm0, %v1181_v31, %v1182_v32 }
  0x88   : > { %1607 = vrot.lane.b32.xlu0 %v1456_v43, %s2819_s26  ;;  %v3314_v43 = vld [vmem:[%s2865_s19 + $0x48] sm:$0xff]   ;;  %v1097_v48 = vshll.u32 %v3307_v40, 16  ;;  %v1206_v20 = vrot.slane %v3307_v40, 1  ;;  %v1208_v40 = vrot.slane %v3304_v37, 1 }
  0x89   : > { %v3234_v46 = vpop.permute.xlu1 %769  ;;  %v1008_v59 = vshll.u32 %v3314_v43, 16  ;;  %v1006_v63 = vshrl.u32 %v3314_v43, 16  ;;  %v1184_v44 = vrot.slane %v3314_v43, 1 }
  0x8a   : > { %v3243_v58 = vpop.permute.xlu0 %753 }
  0x8b   : > { %1701 = vrot.lane.b32.xlu1 %v1665_v47, %s2820_s27  ;;  %v994_v47 = vshrl.u32 %v3290_v19, 16  ;;  %v1010_v50 = vrot.slane %v1008_v59, 1  ;;  %v1561_v59 = vshll.u32 %v3381_v41, 16 }
  0x8c   : > { %1685 = vrot.lane.b32.xlu0 %v1641_v52, %s2820_s27  ;;  %v1104_v52 = vshll.u32 %v3304_v37, 16 }
  0x8d   : > { %v3251_v55 = vpop.permute.xlu1 %771  ;;  %v999_v3 = vor.u32 %v998_v49, %v994_v47  ;;  %v1011_v18 = vor.u32 %v1010_v50, %v1006_v63  ;;  %v1185_v47 = vrot.slane %v3334_v56, 1  ;;  %v3419_v63 = vld [vmem:[%s2865_s19 + $0xbc] ss:$0 sps:$4 sm:$0x11]  }
  0x8e   : > { %v3259_v9 = vpop.permute.xlu0 %755  ;;  %v1106_v4 = vrot.slane %v1104_v52, 1  ;;  %v3397_v52 = vld [vmem:[%s2865_s19 + $0x50] ss:$0 sps:$4 sm:$0x11]  }
  0x8f   : > { %696 = vrot.lane.b32.xlu1 %v635_v2, %s2815_s22  ;;  %v1099_v2 = vrot.slane %v1097_v48, 1  ;;  %v1460_v48 = vshll.u32 %v3375_v1, 16 }
  0x90   : > { %680 = vrot.lane.b32.xlu0 %v539_v8, %s2815_s22  ;;  %v1107_v14 = vor.u32 %v1106_v4, %v1102_v62  ;;  %v1186_v4 = vsel %vm704_vm0, %v1184_v44, %v1185_v47  ;;  %v3462_v47 = vld [vmem:[%s2865_s19 + $0xa8] sm:$0xff]  }
  0x91   : > { %v3264_v15 = vpop.permute.xlu1 %674  ;;  %v1100_v13 = vsel %vm479_vm1, %v1095_v61, %v1099_v2  ;;  %v2778_v61 = vld [vmem:[%s2865_s19] sm:$0xff]   ;;  %v3414_v2 = vld [vmem:[%s2865_s19 + $0x54] sm:$0xff]  }
  0x92   : > { %v3267_v17 = vpop.permute.xlu0 %672 }
  0x93   : > { %1703 = vrot.lane.b32.xlu1 %v1668_v10, %s2820_s27  ;;  %v1013_v10 = vshll.u32 %v3334_v56, 16  ;;  %v1715_v62 = vsel %vm1713_vm3, %v2778_v61, %v3267_v17 }
  0x94   : > { %1687 = vrot.lane.b32.xlu0 %v1644_v16, %s2820_s27  ;;  %v1111_v16 = vrot.slane %v1109_v7, 1  ;;  %v1458_v7 = vshrl.u32 %v3375_v1, 16 }
  0x95   : > { %v3274_v22 = vpop.permute.xlu1 %690  ;;  %v1015_v21 = vrot.slane %v1013_v10, 1  ;;  %v1465_v10 = vshll.u32 %v3397_v52, 16 }
  0x96   : > { %v3279_v26 = vpop.permute.xlu0 %688  ;;  %v1112_v25 = vsel %vm479_vm1, %v1107_v14, %v1111_v16  ;;  %v1563_v16 = vrot.slane %v1561_v59, 1  ;;  %v2780_v59 = vld [vmem:[%s2865_s19 + $0xc] sm:$0xff]  }
  0x97   : > { %698 = vrot.lane.b32.xlu1 %v647_v5, %s2815_s22  ;;  %v1004_v5 = vsel %vm479_vm1, %v999_v3, %v1003_v57  ;;  %v1462_v57 = vrot.slane %v1460_v48, 1  ;;  %v2779_v48 = vld [vmem:[%s2865_s19 + $0x6c] sm:$0xff]   ;;  %v1717_v61 = vsel %vm1713_vm3, %v2780_v59, %v3264_v15  ;;  %v1645_v15 = vrot.slane %v3375_v1, 1 }
  0x98   : > { %682 = vrot.lane.b32.xlu0 %v551_v23, %s2815_s22 }
  0x99   : > { %v3292_v28 = vpop.permute.xlu1 %883 }
  0x9a   : > { %v3297_v34 = vpop.permute.xlu0 %867 }
  0x9b   : > { %777 = vrot.lane.b32.xlu1 %v743_v11, %s2814_s21  ;;  %v1205_v11 = vrot.slane %v3283_v27, 1 }
  0x9c   : > { %761 = vrot.lane.b32.xlu0 %v719_v30, %s2814_s21  ;;  %v1016_v30 = vsel %vm479_vm1, %v1011_v18, %v1015_v21  ;;  %v1566_v18 = vshrl.u32 %v3404_v54, 16  ;;  %v1472_v21 = vshll.u32 %v3414_v2, 16 }
  0x9d   : > { %v3310_v38 = vpop.permute.xlu1 %1153 }
  0x9e   : > { %v3319_v33 = vpop.permute.xlu0 %1137 }
  0x9f   : > { %779 = vrot.lane.b32.xlu1 %v746_v36, %s2814_s21 }
  0xa0   : > { %763 = vrot.lane.b32.xlu0 %v722_v42, %s2814_s21  ;;  %v1209_v42 = vrot.slane %v3327_v51, 1 }
  0xa1   : > { %v3330_v53 = vpop.permute.xlu1 %1155 }
  0xa2   : > { %v3337_v60 = vpop.permute.xlu0 %1139 }
  0xa3   : > { %889 = vrot.lane.b32.xlu1 %v3283_v27, %s2813_s20  ;;  %v1556_v27 = vshll.u32 %v3363_v24, 16 }
  0xa4   : > { %873 = vrot.lane.b32.xlu0 %v3290_v19, %s2813_s20  ;;  %v1207_v19 = vsel %vm704_vm0, %v1205_v11, %v1206_v20  ;;  %v1573_v20 = vshll.u32 %v3419_v63, 16 }
  0xa5   : > { %v3345_v8 = vpop.permute.xlu1 %1233  ;;  %v1558_v56 = vrot.slane %v1556_v27, 1 }
  0xa6   : > { %v3349_v12 = vpop.permute.xlu0 %1217 }
  0xa7   : > { %891 = vrot.lane.b32.xlu1 %v3304_v37, %s2813_s20  ;;  %v2777_v37 = vld [vmem:[%s2865_s19 + $0x60] sm:$0xff]  }
  0xa8   : > { %875 = vrot.lane.b32.xlu0 %v3314_v43, %s2813_s20  ;;  %v1731_v51 = vsel %vm1713_vm3, %v2777_v37, %v3279_v26  ;;  %v1554_v43 = vshrl.u32 %v3363_v24, 16  ;;  %v1210_v26 = vsel %vm704_vm0, %v1208_v40, %v1209_v42  ;;  %v1733_v37 = vsel %vm1713_vm3, %v2779_v48, %v3274_v22 }
  0xa9   : > { %v3356_v6 = vpop.permute.xlu1 %1235  ;;  %v1764_v17 = vsel %vm1746_vm4, %v1731_v51, %v3234_v46  ;;  %v3431_v46 = vld [vmem:[%s2865_s19 + $0x5c] ss:$0 sps:$4 sm:$0x11]  }
  0xaa   : > { %v3359_v23 = vpop.permute.xlu0 %1219  ;;  %v1559_v14 = vor.u32 %v1558_v56, %v1554_v43  ;;  %v3471_v56 = vld [vmem:[%s2865_s19 + $0x48] sm:$0xff]  }
  0xab   : > { %1161 = vrot.lane.b32.xlu1 %v1100_v13, %s2816_s23  ;;  %v1748_v13 = vsel %vm1746_vm4, %v1715_v62, %v3243_v58  ;;  %v1463_v58 = vor.u32 %v1462_v57, %v1458_v7  ;;  %v1670_v7 = vrot.slane %v3381_v41, 1  ;;  %v3486_v57 = vld [vmem:[%s2865_s19 + $0xb0] ss:$0 sps:$4 sm:$0x11]  }
  0xac   : > { %1145 = vrot.lane.b32.xlu0 %v1004_v5, %s2816_s23  ;;  %v1568_v5 = vshll.u32 %v3404_v54, 16  ;;  %v1781_v32 = vsel %vm1779_vm5, %v1748_v13, %v3223_v39  ;;  %v651_v13 = vshll.u32 %v3462_v47, 16 }
  0xad   : > { %v3369_v0 = vpop.permute.xlu1 %1345  ;;  %v1814_v40 = vsel %vm1812_vm6, %v1781_v32, %v3319_v33  ;;  %v1474_v33 = vrot.slane %v1472_v21, 1  ;;  %v3527_v32 = vld [vmem:[%s2865_s19 + $0xb4] sm:$0xff]  }
  0xae   : > { %v3377_v36 = vpop.permute.xlu0 %1329  ;;  %v1847_v39 = vsel %vm1845_vm7, %v1814_v40, %v3349_v12 }
  0xaf   : > { %1163 = vrot.lane.b32.xlu1 %v1112_v25, %s2816_s23  ;;  %v1797_v25 = vsel %vm1779_vm5, %v1764_v17, %v3207_v29  ;;  %v1669_v29 = vrot.slane %v3363_v24, 1  ;;  %v1880_v51 = vsel %vm1878_vm8, %v1847_v39, %v3377_v36  ;;  %v1766_v17 = vsel %vm1746_vm4, %v1733_v37, %v3251_v55  ;;  %v3502_v55 = vld [vmem:[%s2865_s19 + $0x50] ss:$0 sps:$4 sm:$0x11]  }
  0xb0   : > { %1147 = vrot.lane.b32.xlu0 %v1016_v30, %s2816_s23  ;;  %v1470_v30 = vshrl.u32 %v3414_v2, 16  ;;  %v1830_v31 = vsel %vm1812_vm6, %v1797_v25, %v3310_v38  ;;  %v1564_v38 = vsel %vm479_vm1, %v1559_v14, %v1563_v16  ;;  %v1799_v14 = vsel %vm1779_vm5, %v1766_v17, %v3292_v28 }
  0xb1   : > { %v3388_v45 = vpop.permute.xlu1 %1347  ;;  %v1863_v42 = vsel %vm1845_vm7, %v1830_v31, %v3345_v8  ;;  %v1477_v8 = vshll.u32 %v3431_v46, 16  ;;  %v1646_v16 = vrot.slane %v3397_v52, 1  ;;  %v1832_v21 = vsel %vm1812_vm6, %v1799_v14, %v3330_v53 }
  0xb2   : > { %v3394_v49 = vpop.permute.xlu0 %1331  ;;  %v1896_v44 = vsel %vm1878_vm8, %v1863_v42, %v3369_v0  ;;  %v1575_v0 = vrot.slane %v1573_v20, 1  ;;  %v649_v28 = vshrl.u32 %v3462_v47, 16  ;;  %v656_v20 = vshll.u32 %v3486_v57, 16 }
  0xb3   : > { %1241 = vrot.lane.b32.xlu1 %v1207_v19, %s2817_s24  ;;  %v1467_v19 = vrot.slane %v1465_v10, 1  ;;  %v1479_v10 = vrot.slane %v1477_v8, 1  ;;  %v653_v31 = vrot.slane %v651_v13, 1  ;;  %v663_v8 = vshll.u32 %v3527_v32, 16 }
  0xb4   : > { %1225 = vrot.lane.b32.xlu0 %v1183_v35, %s2817_s24  ;;  %v1570_v35 = vrot.slane %v1568_v5, 1  ;;  %v555_v5 = vshll.u32 %v3471_v56, 16  ;;  %v1647_v37 = vsel %vm704_vm0, %v1645_v15, %v1646_v16 }
  0xb5   : > { %v1618_v3 = vpop.permute.xlu1 %1617  ;;  %v1468_v22 = vsel %vm479_vm1, %v1463_v58, %v1467_v19  ;;  %v1865_v58 = vsel %vm1845_vm7, %v1832_v21, %v3356_v6  ;;  %v748_v21 = vrot.slane %v3486_v57, 1 }
  0xb6   : > { %v1602_v50 = vpop.permute.xlu0 %1601  ;;  %v1929_v12 = vsel %vm1911_vm9, %v1896_v44, %v1618_v3  ;;  %v1571_v3 = vor.u32 %v1570_v35, %v1566_v18  ;;  %v557_v42 = vrot.slane %v555_v5, 1 }
  0xb7   : > { %1243 = vrot.lane.b32.xlu1 %v1210_v26, %s2817_s24  ;;  %v1913_v62 = vsel %vm1911_vm9, %v1880_v51, %v1602_v50  ;;  %v1475_v50 = vor.u32 %v1474_v33, %v1470_v30  ;;  %v1898_v30 = vsel %vm1878_vm8, %v1865_v58, %v3388_v45  ;;  %v2758_v33 = vld [vmem:[%s2865_s19 + $0xbc] ss:$0 sps:$4 sm:$0x11]   ;;  %v724_v58 = vrot.slane %v3502_v55, 1 }
  0xb8   : > { %1227 = vrot.lane.b32.xlu0 %v1186_v4, %s2817_s24 }
  0xb9   : > { %v3436_v11 = vpop.permute.xlu1 %1619 }
  0xba   : > { %v3444_v27 = vpop.permute.xlu0 %1603  ;;  %v1931_v19 = vsel %vm1911_vm9, %v1898_v30, %v3436_v11  ;;  %v654_v11 = vor.u32 %v653_v31, %v649_v28  ;;  %v751_v30 = vrot.slane %v2758_v33, 1 }
  0xbb   : > { %1353 = vrot.lane.b32.xlu1 %v3363_v24, %s2818_s25  ;;  %v1672_v24 = vrot.slane %v3404_v54, 1 }
  0xbc   : > { %1337 = vrot.lane.b32.xlu0 %v3375_v1, %s2818_s25  ;;  %v1750_v1 = vsel %vm1746_vm4, %v1717_v61, %v3259_v9  ;;  %v553_v9 = vshrl.u32 %v3471_v56, 16  ;;  %v1648_v61 = vrot.slane %v3414_v2, 1 }
  0xbd   : > { %v1698_v43 = vpop.permute.xlu1 %1697  ;;  %v1783_v18 = vsel %vm1779_vm5, %v1750_v1, %v3297_v34  ;;  %v1576_v34 = vsel %vm479_vm1, %v1571_v3, %v1575_v0 }
  0xbe   : > { %v1682_v26 = vpop.permute.xlu0 %1681  ;;  %v1962_v4 = vsel %vm1944_vm10, %v1929_v12, %v1698_v43  ;;  %v1816_v52 = vsel %vm1812_vm6, %v1783_v18, %v3337_v60  ;;  %v1480_v60 = vsel %vm479_vm1, %v1475_v50, %v1479_v10  ;;  %v558_v51 = vor.u32 %v557_v42, %v553_v9  ;;  %v2760_v43 = vld [vmem:[%s2865_s19 + $0x5c] ss:$0 sps:$4 sm:$0x11]  }
  0xbf   : > { %1355 = vrot.lane.b32.xlu1 %v3404_v54, %s2818_s25  ;;  %v1946_v36 = vsel %vm1944_vm10, %v1913_v62, %v1682_v26  ;;  %2621 = vmatprep.mubr.msk.bf16.mxu1 %vm2004_vm11, %v1962_v4  ;;  %v1849_v53 = vsel %vm1845_vm7, %v1816_v52, %v3359_v23  ;;  %v560_v23 = vshll.u32 %v3502_v55, 16  ;;  %v1649_v62 = vrot.slane %v3431_v46, 1 }
  0xc0   : > { %1339 = vrot.lane.b32.xlu0 %v3414_v2, %s2818_s25  ;;  %2605 = vmatprep.mubr.msk.bf16.mxu0 %vm2004_vm11, %v1946_v36  ;;  %v1882_v6 = vsel %vm1878_vm8, %v1849_v53, %v3394_v49  ;;  %v1671_v49 = vsel %vm704_vm0, %v1669_v29, %v1670_v7  ;;  %v1673_v29 = vrot.slane %v3419_v63, 1  ;;  %v661_v4 = vshrl.u32 %v3527_v32, 16 }
  0xc1   : > { %v3498_v41 = vpop.permute.xlu1 %692  ;;  %v1915_v45 = vsel %vm1911_vm9, %v1882_v6, %v3444_v27  ;;  %v658_v27 = vrot.slane %v656_v20, 1  ;;  %v562_v12 = vrot.slane %v560_v23, 1  ;;  %v668_v36 = vshll.u32 %v2758_v33, 16  ;;  %v3593_v20 = vld [vmem:[%s2865_s19 + $0xb4] sm:$0xff]  }
  0xc2   : > { %v3509_v25 = vpop.permute.xlu0 %676  ;;  %v572_v63 = vshll.u32 %v2760_v43, 16  ;;  %v1674_v2 = vsel %vm704_vm0, %v1672_v24, %v1673_v29  ;;  %v1650_v13 = vsel %vm704_vm0, %v1648_v61, %v1649_v62  ;;  %v747_v18 = vrot.slane %v3462_v47, 1  ;;  %v2768_v62 = vld [vmem:[%s2865_s19 + $0x68] ss:$0 sps:$4 sm:$0x11]  }
  0xc3   : > { %1625 = vrot.lane.b32.xlu1 %v1564_v38, %s2819_s26  ;;  %v3535_v38 = vld [vmem:[%s2865_s19 + $0x54] sm:$0xff]   ;;  %v659_v26 = vsel %vm479_vm1, %v654_v11, %v658_v27  ;;  %v563_v7 = vsel %vm479_vm1, %v558_v51, %v562_v12  ;;  %v670_v50 = vrot.slane %v668_v36, 1  ;;  %v723_v52 = vrot.slane %v3471_v56, 1  ;;  %v2766_v11 = vld [vmem:[%s2865_s19 + $0x5c] ss:$0 sps:$4 sm:$0x11]  }
  0xc4   : > { %1609 = vrot.lane.b32.xlu0 %v1468_v22, %s2819_s26  ;;  %v567_v0 = vshll.u32 %v3535_v38, 16  ;;  %v665_v22 = vrot.slane %v663_v8, 1  ;;  %v565_v54 = vshrl.u32 %v3535_v38, 16  ;;  %v574_v1 = vrot.slane %v572_v63, 1 }
  0xc5   : > { %v1700_v40 = vpop.permute.xlu1 %1699  ;;  %v749_v57 = vsel %vm704_vm0, %v747_v18, %v748_v21  ;;  %v750_v53 = vrot.slane %v3527_v32, 1  ;;  %v725_v55 = vsel %vm704_vm0, %v723_v52, %v724_v58  ;;  %v726_v31 = vrot.slane %v3535_v38, 1 }
  0xc6   : > { %v1964_v35 = vsel %vm1944_vm10, %v1931_v19, %v1700_v40  ;;  %v1684_v39 = vpop.permute.xlu0 %1683  ;;  %v569_v15 = vrot.slane %v567_v0, 1  ;;  %v666_v46 = vor.u32 %v665_v22, %v661_v4  ;;  %v727_v6 = vrot.slane %v2760_v43, 1  ;;  %v3603_v19 = vld [vmem:[%s2865_s19 + $0x54] sm:$0xff]   ;;  %v2767_v43 = vld [vmem:[%s2865_s19 + $0xc8] ss:$0 sps:$4 sm:$0x11]  }
  0xc7   : > { %v1948_v44 = vsel %vm1944_vm10, %v1915_v45, %v1684_v39  ;;  %1627 = vrot.lane.b32.xlu1 %v1576_v34, %s2819_s26  ;;  %2622 = vmatmul.mubr.msk.bf16.vlgmr.msra.gmra.mrb[0].mxu1 %vm2004_vm11, %v1964_v35  ;;  %v1116_v42 = vshll.u32 %v3593_v20, 16  ;;  %v752_v23 = vsel %vm704_vm0, %v750_v53, %v751_v30  ;;  %v3612_v45 = vld [vmem:[%s2865_s19 + $0xc0] sm:$0xff]   ;;  %v2765_v35 = vld [vmem:[%s2865_s19 + $0xbc] ss:$0 sps:$4 sm:$0x11]   ;;  %v1020_v27 = vshll.u32 %v3603_v19, 16 }
  0xc8   : > { %1611 = vrot.lane.b32.xlu0 %v1480_v60, %s2819_s26  ;;  %2606 = vmatmul.mubr.msk.bf16.vlgmr.msra.gmra.mrb[0].mxu0 %vm2004_vm11, %v1948_v44  ;;  %v570_v14 = vor.u32 %v569_v15, %v565_v54  ;;  %v671_v5 = vsel %vm479_vm1, %v666_v46, %v670_v50  ;;  %v728_v44 = vsel %vm704_vm0, %v726_v31, %v727_v6  ;;  %v1114_v8 = vshrl.u32 %v3593_v20, 16 }
  0xc9   : > { %v3550_v48 = vpop.permute.xlu1 %694  ;;  %v1121_v51 = vshll.u32 %v2765_v35, 16  ;;  %v1018_v12 = vshrl.u32 %v3603_v19, 16  ;;  %v1128_v0 = vshll.u32 %v3612_v45, 16  ;;  %v1022_v29 = vrot.slane %v1020_v27, 1 }
  0xca   : > { %v3555_v59 = vpop.permute.xlu0 %678  ;;  %v575_v9 = vsel %vm479_vm1, %v570_v14, %v574_v1  ;;  %v1025_v61 = vshll.u32 %v2766_v11, 16  ;;  %v1126_v36 = vshrl.u32 %v3612_v45, 16  ;;  %v1133_v15 = vshll.u32 %v2767_v43, 16 }
  0xcb   : > { %1705 = vrot.lane.b32.xlu1 %v1671_v49, %s2820_s27  ;;  %v3619_v49 = vld [vmem:[%s2865_s19 + $0x60] sm:$0xff]   ;;  %v1130_v54 = vrot.slane %v1128_v0, 1  ;;  %v1023_v46 = vor.u32 %v1022_v29, %v1018_v12  ;;  %v1037_v14 = vshll.u32 %v2768_v62, 16  ;;  %v1212_v31 = vrot.slane %v2765_v35, 1 }
  0xcc   : > { %1689 = vrot.lane.b32.xlu0 %v1647_v37, %s2820_s27  ;;  %v1118_v37 = vrot.slane %v1116_v42, 1  ;;  %v1030_v63 = vshrl.u32 %v3619_v49, 16  ;;  %v1027_v50 = vrot.slane %v1025_v61, 1  ;;  %v1135_v21 = vrot.slane %v1133_v15, 1 }
  0xcd   : > { %v3565_v3 = vpop.permute.xlu1 %773  ;;  %v1131_v18 = vor.u32 %v1130_v54, %v1126_v36  ;;  %v1214_v35 = vrot.slane %v3612_v45, 1  ;;  %v1190_v12 = vrot.slane %v3619_v49, 1  ;;  %v1191_v0 = vrot.slane %v2768_v62, 1  ;;  %v3682_v29 = vld [vmem:[%s2865_s19 + $0xc8] ss:$0 sps:$4 sm:$0x11]  }
  0xce   : > { %v3569_v17 = vpop.permute.xlu0 %757  ;;  %v1119_v22 = vor.u32 %v1118_v37, %v1114_v8  ;;  %v1028_v52 = vsel %vm479_vm1, %v1023_v46, %v1027_v50  ;;  %v3668_v8 = vld [vmem:[%s2865_s19 + $0xc0] sm:$0xff]   ;;  %v1215_v37 = vrot.slane %v2767_v43, 1  ;;  %v1585_v54 = vshll.u32 %v3682_v29, 16  ;;  %v2781_v50 = vld [vmem:[%s2865_s19 + $0x78] sm:$0xff]  }
  0xcf   : > { %700 = vrot.lane.b32.xlu1 %v659_v26, %s2815_s22  ;;  %v1032_v26 = vshll.u32 %v3619_v49, 16  ;;  %v1136_v30 = vsel %vm479_vm1, %v1131_v18, %v1135_v21  ;;  %v1192_v36 = vsel %vm704_vm0, %v1190_v12, %v1191_v0 }
  0xd0   : > { %684 = vrot.lane.b32.xlu0 %v563_v7, %s2815_s22  ;;  %v1123_v7 = vrot.slane %v1121_v51, 1  ;;  %v3675_v51 = vld [vmem:[%s2865_s19 + $0x60] sm:$0xff]   ;;  %v1216_v43 = vsel %vm704_vm0, %v1214_v35, %v1215_v37 }
  0xd1   : > { %v3574_v10 = vpop.permute.xlu1 %775 }
  0xd2   : > { %v3577_v16 = vpop.permute.xlu0 %759 }
  0xd3   : > { %1707 = vrot.lane.b32.xlu1 %v1674_v2, %s2820_s27 }
  0xd4   : > { %1691 = vrot.lane.b32.xlu0 %v1650_v13, %s2820_s27  ;;  %v1034_v13 = vrot.slane %v1032_v26, 1  ;;  %v1580_v26 = vshll.u32 %v3668_v8, 16 }
  0xd5   : > { %v3584_v28 = vpop.permute.xlu1 %885 }
  0xd6   : > { %v3589_v34 = vpop.permute.xlu0 %869  ;;  %v1035_v58 = vor.u32 %v1034_v13, %v1030_v63  ;;  %v1578_v63 = vshrl.u32 %v3668_v8, 16  ;;  %v1582_v46 = vrot.slane %v1580_v26, 1  ;;  %v1735_v13 = vsel %vm1713_vm3, %v2781_v50, %v3498_v41  ;;  %v2783_v50 = vld [vmem:[%s2865_s19 + $0x84] sm:$0xff]  }
  0xd7   : > { %702 = vrot.lane.b32.xlu1 %v671_v5, %s2815_s22  ;;  %v1124_v5 = vsel %vm479_vm1, %v1119_v22, %v1123_v7  ;;  %v3694_v22 = vld [vmem:[%s2865_s19 + $0x68] ss:$0 sps:$4 sm:$0x11]   ;;  %v3699_v7 = vld [vmem:[%s2865_s19 + $0x6c] sm:$0xff]  }
  0xd8   : > { %686 = vrot.lane.b32.xlu0 %v575_v9, %s2815_s22  ;;  %v1583_v37 = vor.u32 %v1582_v46, %v1578_v63 }
  0xd9   : > { %v3598_v60 = vpop.permute.xlu1 %887 }
  0xda   : > { %v3605_v40 = vpop.permute.xlu0 %871 }
  0xdb   : > { %781 = vrot.lane.b32.xlu1 %v749_v57, %s2814_s21  ;;  %v1039_v57 = vrot.slane %v1037_v14, 1  ;;  %v1482_v14 = vshrl.u32 %v3675_v51, 16 }
  0xdc   : > { %765 = vrot.lane.b32.xlu0 %v725_v55, %s2814_s21  ;;  %v1211_v55 = vrot.slane %v3593_v20, 1 }
  0xdd   : > { %v3615_v39 = vpop.permute.xlu1 %1157  ;;  %v1040_v42 = vsel %vm479_vm1, %v1035_v58, %v1039_v57  ;;  %v1768_v57 = vsel %vm1746_vm4, %v1735_v13, %v3565_v3  ;;  %v1737_v13 = vsel %vm1713_vm3, %v2783_v50, %v3550_v48 }
  0xde   : > { %v3623_v33 = vpop.permute.xlu0 %1141 }
  0xdf   : > { %783 = vrot.lane.b32.xlu1 %v752_v23, %s2814_s21  ;;  %v1187_v23 = vrot.slane %v3603_v19, 1 }
  0xe0   : > { %767 = vrot.lane.b32.xlu0 %v728_v44, %s2814_s21  ;;  %v1188_v44 = vrot.slane %v2766_v11, 1 }
  0xe1   : > { %v3631_v24 = vpop.permute.xlu1 %1159 }
  0xe2   : > { %v3635_v4 = vpop.permute.xlu0 %1143  ;;  %v1189_v11 = vsel %vm704_vm0, %v1187_v23, %v1188_v44  ;;  %v1587_v23 = vrot.slane %v1585_v54, 1  ;;  %v3725_v44 = vld [vmem:[%s2865_s19 + $0x74] ss:$0 sps:$4 sm:$0x11]  }
  0xe3   : > { %893 = vrot.lane.b32.xlu1 %v3593_v20, %s2813_s20  ;;  %v1213_v20 = vsel %vm704_vm0, %v1211_v55, %v1212_v31  ;;  %v1801_v31 = vsel %vm1779_vm5, %v1768_v57, %v3584_v28  ;;  %v1501_v54 = vshll.u32 %v3725_v44, 16 }
  0xe4   : > { %877 = vrot.lane.b32.xlu0 %v3603_v19, %s2813_s20  ;;  %v1588_v46 = vsel %vm479_vm1, %v1583_v37, %v1587_v23  ;;  %v1675_v23 = vrot.slane %v3668_v8, 1  ;;  %v1652_v37 = vrot.slane %v3694_v22, 1 }
  0xe5   : > { %v3643_v2 = vpop.permute.xlu1 %1237 }
  0xe6   : > { %v3645_v1 = vpop.permute.xlu0 %1221 }
  0xe7   : > { %895 = vrot.lane.b32.xlu1 %v3612_v45, %s2813_s20  ;;  %v3689_v45 = vld [vmem:[%s2865_s19 + $0xcc] sm:$0xff]  }
  0xe8   : > { %879 = vrot.lane.b32.xlu0 %v3619_v49, %s2813_s20  ;;  %v1484_v49 = vshll.u32 %v3675_v51, 16  ;;  %v1590_v18 = vshrl.u32 %v3689_v45, 16  ;;  %v1592_v21 = vshll.u32 %v3689_v45, 16 }
  0xe9   : > { %v3652_v9 = vpop.permute.xlu1 %1239 }
  0xea   : > { %v3655_v53 = vpop.permute.xlu0 %1223  ;;  %v1486_v41 = vrot.slane %v1484_v49, 1  ;;  %v1594_v12 = vrot.slane %v1592_v21, 1  ;;  %v2784_v21 = vld [vmem:[%s2865_s19 + $0x24] sm:$0xff]  }
  0xeb   : > { %1165 = vrot.lane.b32.xlu1 %v1124_v5, %s2816_s23  ;;  %v3709_v5 = vld [vmem:[%s2865_s19 + $0xd4] ss:$0 sps:$4 sm:$0x11]  }
  0xec   : > { %1149 = vrot.lane.b32.xlu0 %v1028_v52, %s2816_s23  ;;  %v2782_v52 = vld [vmem:[%s2865_s19 + $0x18] sm:$0xff]  }
  0xed   : > { %v3661_v6 = vpop.permute.xlu1 %1349  ;;  %v1719_v58 = vsel %vm1713_vm3, %v2782_v52, %v3509_v25  ;;  %v1496_v25 = vshll.u32 %v3699_v7, 16  ;;  %v1770_v52 = vsel %vm1746_vm4, %v1737_v13, %v3574_v10 }
  0xee   : > { %v3665_v27 = vpop.permute.xlu0 %1333  ;;  %v1752_v55 = vsel %vm1746_vm4, %v1719_v58, %v3569_v17 }
  0xef   : > { %1167 = vrot.lane.b32.xlu1 %v1136_v30, %s2816_s23  ;;  %v1489_v30 = vshll.u32 %v3694_v22, 16  ;;  %v1785_v3 = vsel %vm1779_vm5, %v1752_v55, %v3589_v34  ;;  %v1597_v34 = vshll.u32 %v3709_v5, 16 }
  0xf0   : > { %1151 = vrot.lane.b32.xlu0 %v1040_v42, %s2816_s23  ;;  %v1818_v17 = vsel %vm1812_vm6, %v1785_v3, %v3623_v33  ;;  %v1487_v33 = vor.u32 %v1486_v41, %v1482_v14 }
  0xf1   : > { %v3677_v19 = vpop.permute.xlu1 %1351  ;;  %v1491_v26 = vrot.slane %v1489_v30, 1  ;;  %v1599_v14 = vrot.slane %v1597_v34, 1 }
  0xf2   : > { %v3684_v61 = vpop.permute.xlu0 %1335 }
  0xf3   : > { %1245 = vrot.lane.b32.xlu1 %v1213_v20, %s2817_s24  ;;  %v1834_v20 = vsel %vm1812_vm6, %v1801_v31, %v3615_v39  ;;  %v1851_v39 = vsel %vm1845_vm7, %v1818_v17, %v3645_v1  ;;  %v1492_v48 = vsel %vm479_vm1, %v1487_v33, %v1491_v26 }
  0xf4   : > { %1229 = vrot.lane.b32.xlu0 %v1189_v11, %s2817_s24  ;;  %v1494_v11 = vshrl.u32 %v3699_v7, 16  ;;  %v1867_v28 = vsel %vm1845_vm7, %v1834_v20, %v3643_v2  ;;  %v1884_v2 = vsel %vm1878_vm8, %v1851_v39, %v3665_v27 }
  0xf5   : > { %v1622_v62 = vpop.permute.xlu1 %1621  ;;  %v1900_v0 = vsel %vm1878_vm8, %v1867_v28, %v3661_v6  ;;  %v1655_v28 = vrot.slane %v3725_v44, 1 }
  0xf6   : > { %v1606_v15 = vpop.permute.xlu0 %1605 }
  0xf7   : > { %1247 = vrot.lane.b32.xlu1 %v1216_v43, %s2817_s24  ;;  %v1933_v43 = vsel %vm1911_vm9, %v1900_v0, %v1622_v62  ;;  %v1917_v1 = vsel %vm1911_vm9, %v1884_v2, %v1606_v15  ;;  %v1595_v62 = vor.u32 %v1594_v12, %v1590_v18  ;;  %v1721_v15 = vsel %vm1713_vm3, %v2784_v21, %v3555_v59 }
  0xf8   : > { %1231 = vrot.lane.b32.xlu0 %v1192_v36, %s2817_s24  ;;  %v1498_v36 = vrot.slane %v1496_v25, 1  ;;  %v1754_v58 = vsel %vm1746_vm4, %v1721_v15, %v3577_v16  ;;  %v1803_v18 = vsel %vm1779_vm5, %v1770_v52, %v3598_v60  ;;  %v1503_v59 = vrot.slane %v1501_v54, 1  ;;  %v2785_v15 = vld [vmem:[%s2865_s19 + $0x90] sm:$0xff]  }
  0xf9   : > { %v1624_v42 = vpop.permute.xlu1 %1623  ;;  %v1787_v10 = vsel %vm1779_vm5, %v1754_v58, %v3605_v40  ;;  %v1836_v30 = vsel %vm1812_vm6, %v1803_v18, %v3631_v24  ;;  %v1600_v60 = vsel %vm479_vm1, %v1595_v62, %v1599_v14  ;;  %v1676_v25 = vrot.slane %v3682_v29, 1 }
  0xfa   : > { %v1608_v35 = vpop.permute.xlu0 %1607  ;;  %v1499_v41 = vor.u32 %v1498_v36, %v1494_v11  ;;  %v1820_v31 = vsel %vm1812_vm6, %v1787_v10, %v3635_v4  ;;  %v1869_v16 = vsel %vm1845_vm7, %v1836_v30, %v3652_v9  ;;  %v1651_v4 = vrot.slane %v3675_v51, 1 }
  0xfb   : > { %1357 = vrot.lane.b32.xlu1 %v3668_v8, %s2818_s25  ;;  %v1853_v40 = vsel %vm1845_vm7, %v1820_v31, %v3655_v53  ;;  %v1902_v24 = vsel %vm1878_vm8, %v1869_v16, %v3677_v19  ;;  %v1678_v29 = vrot.slane %v3689_v45, 1 }
  0xfc   : > { %1341 = vrot.lane.b32.xlu0 %v3675_v51, %s2818_s25  ;;  %v1886_v9 = vsel %vm1878_vm8, %v1853_v40, %v3684_v61  ;;  %v1935_v3 = vsel %vm1911_vm9, %v1902_v24, %v1624_v42  ;;  %v1504_v8 = vsel %vm479_vm1, %v1499_v41, %v1503_v59  ;;  %v1677_v51 = vsel %vm704_vm0, %v1675_v23, %v1676_v25 }
  0xfd   : > { %v1702_v49 = vpop.permute.xlu1 %1701  ;;  %v1919_v53 = vsel %vm1911_vm9, %v1886_v9, %v1608_v35  ;;  %v1679_v61 = vrot.slane %v3709_v5, 1  ;;  %v1653_v42 = vsel %vm704_vm0, %v1651_v4, %v1652_v37  ;;  %v1654_v35 = vrot.slane %v3699_v7, 1 }
  0xfe   : > { %v1966_v63 = vsel %vm1944_vm10, %v1933_v43, %v1702_v49  ;;  %v1686_v6 = vpop.permute.xlu0 %1685 }
  0xff   : > { %v1950_v27 = vsel %vm1944_vm10, %v1917_v1, %v1686_v6  ;;  %1359 = vrot.lane.b32.xlu1 %v3689_v45, %s2818_s25  ;;  %2625 = vmatprep.mubr.msk.bf16.mxu1 %vm2004_vm11, %v1966_v63  ;;  %v1680_v34 = vsel %vm704_vm0, %v1678_v29, %v1679_v61  ;;  %v1656_v0 = vsel %vm704_vm0, %v1654_v35, %v1655_v28 }
 0x100   : > { %1343 = vrot.lane.b32.xlu0 %v3699_v7, %s2818_s25  ;;  %2609 = vmatprep.mubr.msk.bf16.mxu0 %vm2004_vm11, %v1950_v27 }
 0x101   : > { %v3773_v57 = vpop.permute.xlu1 %696 }
 0x102   : > { %v3779_v55 = vpop.permute.xlu0 %680  ;;  %v1739_v52 = vsel %vm1713_vm3, %v2785_v15, %v3773_v57 }
 0x103   : > { %1629 = vrot.lane.b32.xlu1 %v1588_v46, %s2819_s26 }
 0x104   : > { %1613 = vrot.lane.b32.xlu0 %v1492_v48, %s2819_s26  ;;  %v2786_v48 = vld [vmem:[%s2865_s19 + $0x30] sm:$0xff]  }
 0x105   : > { %v1704_v20 = vpop.permute.xlu1 %1703  ;;  %v1723_v58 = vsel %vm1713_vm3, %v2786_v48, %v3779_v55 }
 0x106   : > { %v1968_v19 = vsel %vm1944_vm10, %v1935_v3, %v1704_v20  ;;  %v1688_v11 = vpop.permute.xlu0 %1687  ;;  %v2787_v20 = vld [vmem:[%s2865_s19 + $0x9c] sm:$0xff]  }
 0x107   : > { %v1952_v17 = vsel %vm1944_vm10, %v1919_v53, %v1688_v11  ;;  %1631 = vrot.lane.b32.xlu1 %v1600_v60, %s2819_s26  ;;  %2626 = vmatmul.mubr.msk.bf16.gmra.mrb[4].mxu1 %vm2004_vm11, %v1968_v19  ;;  %v2788_v53 = vld [vmem:[%s2865_s19 + $0x3c] sm:$0xff]  }
 0x108   : > { %1615 = vrot.lane.b32.xlu0 %v1504_v8, %s2819_s26  ;;  %2610 = vmatmul.mubr.msk.bf16.gmra.mrb[4].mxu0 %vm2004_vm11, %v1952_v17 }
 0x109   : > { %v699_v22 = vpop.permute.xlu1 %698 }
 0x10a   : > { %v683_v12 = vpop.permute.xlu0 %682  ;;  %v1741_v8 = vsel %vm1713_vm3, %v2787_v20, %v699_v22 }
 0x10b   : > { %1709 = vrot.lane.b32.xlu1 %v1677_v51, %s2820_s27  ;;  %v1725_v19 = vsel %vm1713_vm3, %v2788_v53, %v683_v12 }
 0x10c   : > { %1693 = vrot.lane.b32.xlu0 %v1653_v42, %s2820_s27 }
 0x10d   : > { %v778_v39 = vpop.permute.xlu1 %777 }
 0x10e   : > { %v762_v45 = vpop.permute.xlu0 %761  ;;  %v1772_v18 = vsel %vm1746_vm4, %v1739_v52, %v778_v39 }
 0x10f   : > { %1711 = vrot.lane.b32.xlu1 %v1680_v34, %s2820_s27  ;;  %v1756_v41 = vsel %vm1746_vm4, %v1723_v58, %v762_v45 }
 0x110   : > { %1695 = vrot.lane.b32.xlu0 %v1656_v0, %s2820_s27 }
 0x111   : > { %v780_v5 = vpop.permute.xlu1 %779 }
 0x112   : > { %v764_v33 = vpop.permute.xlu0 %763  ;;  %v1774_v11 = vsel %vm1746_vm4, %v1741_v8, %v780_v5 }
 0x113   : > { %v1758_v17 = vsel %vm1746_vm4, %v1725_v19, %v764_v33 }
 0x115   : > { %v890_v7 = vpop.permute.xlu1 %889 }
 0x116   : > { %v874_v26 = vpop.permute.xlu0 %873  ;;  %v1805_v59 = vsel %vm1779_vm5, %v1772_v18, %v890_v7 }
 0x117   : > { %v1789_v30 = vsel %vm1779_vm5, %v1756_v41, %v874_v26 }
 0x119   : > { %v892_v44 = vpop.permute.xlu1 %891 }
 0x11a   : > { %v876_v2 = vpop.permute.xlu0 %875  ;;  %v1807_v51 = vsel %vm1779_vm5, %v1774_v11, %v892_v44 }
 0x11b   : > { %v1791_v61 = vsel %vm1779_vm5, %v1758_v17, %v876_v2 }
 0x11d   : > { %v1162_v43 = vpop.permute.xlu1 %1161 }
 0x11e   : > { %v1146_v49 = vpop.permute.xlu0 %1145  ;;  %v1838_v31 = vsel %vm1812_vm6, %v1805_v59, %v1162_v43 }
 0x11f   : > { %v1822_v57 = vsel %vm1812_vm6, %v1789_v30, %v1146_v49 }
 0x121   : > { %v1164_v36 = vpop.permute.xlu1 %1163 }
 0x122   : > { %v1148_v54 = vpop.permute.xlu0 %1147  ;;  %v1840_v22 = vsel %vm1812_vm6, %v1807_v51, %v1164_v36 }
 0x123   : > { %v1824_v35 = vsel %vm1812_vm6, %v1791_v61, %v1148_v54 }
 0x125   : > { %v1242_v1 = vpop.permute.xlu1 %1241 }
 0x126   : > { %v1226_v63 = vpop.permute.xlu0 %1225  ;;  %v1871_v60 = vsel %vm1845_vm7, %v1838_v31, %v1242_v1 }
 0x127   : > { %v1855_v55 = vsel %vm1845_vm7, %v1822_v57, %v1226_v63 }
 0x129   : > { %v1244_v6 = vpop.permute.xlu1 %1243 }
 0x12a   : > { %v1228_v46 = vpop.permute.xlu0 %1227  ;;  %v1873_v28 = vsel %vm1845_vm7, %v1840_v22, %v1244_v6 }
 0x12b   : > { %v1857_v12 = vsel %vm1845_vm7, %v1824_v35, %v1228_v46 }
 0x12d   : > { %v1354_v50 = vpop.permute.xlu1 %1353 }
 0x12e   : > { %v1338_v13 = vpop.permute.xlu0 %1337  ;;  %v1904_v23 = vsel %vm1878_vm8, %v1871_v60, %v1354_v50 }
 0x12f   : > { %v1888_v40 = vsel %vm1878_vm8, %v1855_v55, %v1338_v13 }
 0x131   : > { %v1356_v27 = vpop.permute.xlu1 %1355 }
 0x132   : > { %v1340_v62 = vpop.permute.xlu0 %1339  ;;  %v1906_v34 = vsel %vm1878_vm8, %v1873_v28, %v1356_v27 }
 0x133   : > { %v1890_v39 = vsel %vm1878_vm8, %v1857_v12, %v1340_v62 }
 0x135   : > { %v1626_v14 = vpop.permute.xlu1 %1625 }
 0x136   : > { %v1610_v21 = vpop.permute.xlu0 %1609  ;;  %v1937_v24 = vsel %vm1911_vm9, %v1904_v23, %v1626_v14 }
 0x137   : > { %v1921_v4 = vsel %vm1911_vm9, %v1888_v40, %v1610_v21 }
 0x139   : > { %v1628_v10 = vpop.permute.xlu1 %1627 }
 0x13a   : > { %v1612_v16 = vpop.permute.xlu0 %1611  ;;  %v1939_v0 = vsel %vm1911_vm9, %v1906_v34, %v1628_v10 }
 0x13b   : > { %v1923_v5 = vsel %vm1911_vm9, %v1890_v39, %v1612_v16 }
 0x13d   : > { %v1706_v25 = vpop.permute.xlu1 %1705 }
 0x13e   : > { %v1970_v9 = vsel %vm1944_vm10, %v1937_v24, %v1706_v25  ;;  %v1690_v3 = vpop.permute.xlu0 %1689 }
 0x13f   : > { %v1954_v37 = vsel %vm1944_vm10, %v1921_v4, %v1690_v3  ;;  %2629 = vmatprep.mubr.msk.bf16.mxu1 %vm2004_vm11, %v1970_v9 }
 0x140   : > { %2613 = vmatprep.mubr.msk.bf16.mxu0 %vm2004_vm11, %v1954_v37 }
 0x141   : > { %v701_v29 = vpop.permute.xlu1 %700 }
 0x142   : > { %v685_v42 = vpop.permute.xlu0 %684  ;;  %v1743_v30 = vsel %vm1713_vm3, %v3462_v47, %v701_v29 }
 0x143   : > { %v1727_v31 = vsel %vm1713_vm3, %v3471_v56, %v685_v42 }
 0x145   : > { %v1708_v45 = vpop.permute.xlu1 %1707 }
 0x146   : > { %v1972_v33 = vsel %vm1944_vm10, %v1939_v0, %v1708_v45  ;;  %v1692_v7 = vpop.permute.xlu0 %1691 }
 0x147   : > { %v1956_v26 = vsel %vm1944_vm10, %v1923_v5, %v1692_v7  ;;  %2630 = vmatmul.mubr.msk.bf16.gmra.mrb[8].mxu1 %vm2004_vm11, %v1972_v33  ;;  %v3904_v7 = vld [vmem:[%s4019_s2] ss:$0 sm:$0xff] }
 0x148   : > { %2614 = vmatmul.mubr.msk.bf16.gmra.mrb[8].mxu0 %vm2004_vm11, %v1956_v26 }
 0x149   : > { %v703_v44 = vpop.permute.xlu1 %702 }
 0x14a   : > { %v687_v2 = vpop.permute.xlu0 %686  ;;  %v1745_v25 = vsel %vm1713_vm3, %v3527_v32, %v703_v44 }
 0x14b   : > { %v1729_v56 = vsel %vm1713_vm3, %v3535_v38, %v687_v2 }
 0x14d   : > { %v782_v43 = vpop.permute.xlu1 %781 }
 0x14e   : > { %v766_v49 = vpop.permute.xlu0 %765  ;;  %v1776_v16 = vsel %vm1746_vm4, %v1743_v30, %v782_v43 }
 0x14f   : > { %v1760_v57 = vsel %vm1746_vm4, %v1727_v31, %v766_v49 }
 0x151   : > { %v784_v36 = vpop.permute.xlu1 %783 }
 0x152   : > { %v768_v54 = vpop.permute.xlu0 %767  ;;  %v1778_v9 = vsel %vm1746_vm4, %v1745_v25, %v784_v36 }
 0x153   : > { %v1762_v8 = vsel %vm1746_vm4, %v1729_v56, %v768_v54 }
 0x155   : > { %v894_v1 = vpop.permute.xlu1 %893 }
 0x156   : > { %v878_v63 = vpop.permute.xlu0 %877  ;;  %v1809_v60 = vsel %vm1779_vm5, %v1776_v16, %v894_v1 }
 0x157   : > { %v1793_v23 = vsel %vm1779_vm5, %v1760_v57, %v878_v63 }
 0x159   : > { %v896_v6 = vpop.permute.xlu1 %895 }
 0x15a   : > { %v880_v46 = vpop.permute.xlu0 %879  ;;  %v1811_v37 = vsel %vm1779_vm5, %v1778_v9, %v896_v6 }
 0x15b   : > { %v1795_v11 = vsel %vm1779_vm5, %v1762_v8, %v880_v46 }
 0x15d   : > { %v1166_v50 = vpop.permute.xlu1 %1165 }
 0x15e   : > { %v1150_v13 = vpop.permute.xlu0 %1149  ;;  %v1842_v40 = vsel %vm1812_vm6, %v1809_v60, %v1166_v50 }
 0x15f   : > { %v1826_v47 = vsel %vm1812_vm6, %v1793_v23, %v1150_v13 }
 0x161   : > { %v1168_v27 = vpop.permute.xlu1 %1167 }
 0x162   : > { %v1152_v62 = vpop.permute.xlu0 %1151  ;;  %v1844_v17 = vsel %vm1812_vm6, %v1811_v37, %v1168_v27 }
 0x163   : > { %v1828_v61 = vsel %vm1812_vm6, %v1795_v11, %v1152_v62 }
 0x165   : > { %v1246_v14 = vpop.permute.xlu1 %1245 }
 0x166   : > { %v1230_v21 = vpop.permute.xlu0 %1229  ;;  %v1875_v4 = vsel %vm1845_vm7, %v1842_v40, %v1246_v14 }
 0x167   : > { %v1859_v3 = vsel %vm1845_vm7, %v1826_v47, %v1230_v21 }
 0x169   : > { %v1248_v15 = vpop.permute.xlu1 %1247 }
 0x16a   : > { %v1232_v52 = vpop.permute.xlu0 %1231  ;;  %v1877_v22 = vsel %vm1845_vm7, %v1844_v17, %v1248_v15 }
 0x16b   : > { %v1861_v35 = vsel %vm1845_vm7, %v1828_v61, %v1232_v52 }
 0x16d   : > { %v1358_v48 = vpop.permute.xlu1 %1357 }
 0x16e   : > { %v1342_v58 = vpop.permute.xlu0 %1341  ;;  %v1908_v20 = vsel %vm1878_vm8, %v1875_v4, %v1358_v48 }
 0x16f   : > { %v1892_v53 = vsel %vm1878_vm8, %v1859_v3, %v1342_v58 }
 0x171   : > { %v1360_v18 = vpop.permute.xlu1 %1359 }
 0x172   : > { %v1344_v41 = vpop.permute.xlu0 %1343  ;;  %v1910_v28 = vsel %vm1878_vm8, %v1877_v22, %v1360_v18 }
 0x173   : > { %v1894_v12 = vsel %vm1878_vm8, %v1861_v35, %v1344_v41 }
 0x175   : > { %v1630_v59 = vpop.permute.xlu1 %1629 }
 0x176   : > { %v1614_v10 = vpop.permute.xlu0 %1613  ;;  %v1941_v32 = vsel %vm1911_vm9, %v1908_v20, %v1630_v59 }
 0x177   : > { %v1925_v38 = vsel %vm1911_vm9, %v1892_v53, %v1614_v10 }
 0x179   : > { %v1632_v55 = vpop.permute.xlu1 %1631 }
 0x17a   : > { %v1616_v24 = vpop.permute.xlu0 %1615  ;;  %v1943_v34 = vsel %vm1911_vm9, %v1910_v28, %v1632_v55 }
 0x17b   : > { %v1927_v0 = vsel %vm1911_vm9, %v1894_v12, %v1616_v24 }
 0x17d   : > { %v1710_v19 = vpop.permute.xlu1 %1709 }
 0x17e   : > { %v1974_v51 = vsel %vm1944_vm10, %v1941_v32, %v1710_v19  ;;  %v1694_v29 = vpop.permute.xlu0 %1693 }
 0x17f   : > { %v1958_v42 = vsel %vm1944_vm10, %v1925_v38, %v1694_v29  ;;  %2633 = vmatprep.mubr.msk.bf16.mxu1 %vm2004_vm11, %v1974_v51 }
 0x180   : > { %2617 = vmatprep.mubr.msk.bf16.mxu0 %vm2004_vm11, %v1958_v42 }
 0x181   : > { %v1712_v39 = vpop.permute.xlu1 %1711 }
 0x182   : > { %v1976_v45 = vsel %vm1944_vm10, %v1943_v34, %v1712_v39  ;;  %v1696_v5 = vpop.permute.xlu0 %1695 }
 0x183   : > { %v1960_v33 = vsel %vm1944_vm10, %v1927_v0, %v1696_v5  ;;  %2634 = vmatmul.mubr.msk.bf16.gmra.mrb[12].mxu1 %vm2004_vm11, %v1976_v45 }
 0x184   : > { %2618 = vmatmul.mubr.msk.bf16.gmra.mrb[12].mxu0 %vm2004_vm11, %v1960_v33 }
 0x19a   : > { %v2623_v26 = vpop.f32.mrb[0].mxu1 }
 0x19b   : > { %v2607_v44 = vpop.f32.mrb[0].mxu0  ;;  %v2148_v2 = vadd.f32 %v2623_v26, %v3904_v7  ;;  %v2139_v43 = vpop.f32.mrb[1].mxu1 }
 0x19c   : > { %v2084_v49 = vadd.f32 %v2607_v44, %v3904_v7  ;;  %v2075_v36 = vpop.f32.mrb[1].mxu0  ;;  %v2140_v54 = vadd.f32 %v3904_v7, %v2139_v43  ;;  %v2624_v1 = vpop.f32.mrb[2].mxu1 }
 0x19d   : > { %v2220_v63 = vmax.f32 %v2148_v2, 0.0  ;;  %v2076_v6 = vadd.f32 %v3904_v7, %v2075_v36  ;;  %v2608_v46 = vpop.f32.mrb[2].mxu0  ;;  %v2151_v50 = vadd.f32 %v2624_v1, %v3904_v7  ;;  %v2142_v13 = vpop.f32.mrb[3].mxu1 }
 0x19e   : > { %v2204_v27 = vmax.f32 %v2084_v49, 0.0  ;;  %v2218_v62 = vmax.f32 %v2140_v54, 0.0  ;;  %v2087_v14 = vadd.f32 %v2608_v46, %v3904_v7  ;;  %v2078_v21 = vpop.f32.mrb[3].mxu0  ;;  %v2143_v15 = vadd.f32 %v3904_v7, %v2142_v13 }
 0x19f   : > { %2252 = vst.msk [vmem:[%s3911_s16 + $0x90] sm:$0xff] %vm1713_vm3, %v2220_v63  ;;  %v2202_v52 = vmax.f32 %v2076_v6, 0.0  ;;  %v2221_v48 = vmax.f32 %v2151_v50, 0.0  ;;  %v2079_v58 = vadd.f32 %v3904_v7, %v2078_v21 }
 0x1a0   : > { %2236 = vst.msk [vmem:[%s3911_s16 + $0x10] sm:$0xff] %vm1713_vm3, %v2204_v27  ;;  %2250 = vst.msk [vmem:[%s3911_s16 + $0x80] sm:$0xff] %vm1713_vm3, %v2218_v62  ;;  %v2205_v18 = vmax.f32 %v2087_v14, 0.0  ;;  %v2219_v41 = vmax.f32 %v2143_v15, 0.0 }
 0x1a1   : > { %2234 = vst.msk [vmem:[%s3911_s16] sm:$0xff] %vm1713_vm3, %v2202_v52  ;;  %2253 = vst.msk [vmem:[%s3911_s16 + $0x98] sm:$0xff] %vm1713_vm3, %v2221_v48  ;;  %v2203_v59 = vmax.f32 %v2079_v58, 0.0 }
 0x1a2   : > { %2237 = vst.msk [vmem:[%s3911_s16 + $0x18] sm:$0xff] %vm1713_vm3, %v2205_v18  ;;  %2251 = vst.msk [vmem:[%s3911_s16 + $0x88] sm:$0xff] %vm1713_vm3, %v2219_v41 }
 0x1a3   : > { %2235 = vst.msk [vmem:[%s3911_s16 + $0x8] sm:$0xff] %vm1713_vm3, %v2203_v59 }
 0x1da   : > { %v2627_v10 = vpop.f32.mrb[4].mxu1 }
 0x1db   : > { %v2611_v30 = vpop.f32.mrb[4].mxu0  ;;  %v2164_v31 = vadd.f32 %v2627_v10, %v3904_v7  ;;  %v2155_v16 = vpop.f32.mrb[5].mxu1 }
 0x1dc   : > { %v2100_v57 = vadd.f32 %v2611_v30, %v3904_v7  ;;  %v2091_v60 = vpop.f32.mrb[5].mxu0  ;;  %v2156_v55 = vadd.f32 %v3904_v7, %v2155_v16  ;;  %v2628_v23 = vpop.f32.mrb[6].mxu1 }
 0x1dd   : > { %v2224_v40 = vmax.f32 %v2164_v31, 0.0  ;;  %v2092_v24 = vadd.f32 %v3904_v7, %v2091_v60  ;;  %v2612_v25 = vpop.f32.mrb[6].mxu0  ;;  %v2167_v47 = vadd.f32 %v2628_v23, %v3904_v7  ;;  %v2158_v4 = vpop.f32.mrb[7].mxu1 }
 0x1de   : > { %v2208_v56 = vmax.f32 %v2100_v57, 0.0  ;;  %v2222_v9 = vmax.f32 %v2156_v55, 0.0  ;;  %v2103_v3 = vadd.f32 %v2612_v25, %v3904_v7  ;;  %v2094_v20 = vpop.f32.mrb[7].mxu0  ;;  %v2159_v8 = vadd.f32 %v3904_v7, %v2158_v4 }
 0x1df   : > { %2256 = vst.msk [vmem:[%s3911_s16 + $0xb0] sm:$0xff] %vm1713_vm3, %v2224_v40  ;;  %v2206_v37 = vmax.f32 %v2092_v24, 0.0  ;;  %v2225_v53 = vmax.f32 %v2167_v47, 0.0  ;;  %v2095_v32 = vadd.f32 %v3904_v7, %v2094_v20 }
 0x1e0   : > { %2240 = vst.msk [vmem:[%s3911_s16 + $0x30] sm:$0xff] %vm1713_vm3, %v2208_v56  ;;  %2254 = vst.msk [vmem:[%s3911_s16 + $0xa0] sm:$0xff] %vm1713_vm3, %v2222_v9  ;;  %v2209_v19 = vmax.f32 %v2103_v3, 0.0  ;;  %v2223_v11 = vmax.f32 %v2159_v8, 0.0 }
 0x1e1   : > { %2238 = vst.msk [vmem:[%s3911_s16 + $0x20] sm:$0xff] %vm1713_vm3, %v2206_v37  ;;  %2257 = vst.msk [vmem:[%s3911_s16 + $0xb8] sm:$0xff] %vm1713_vm3, %v2225_v53  ;;  %v2207_v17 = vmax.f32 %v2095_v32, 0.0 }
 0x1e2   : > { %2241 = vst.msk [vmem:[%s3911_s16 + $0x38] sm:$0xff] %vm1713_vm3, %v2209_v19  ;;  %2255 = vst.msk [vmem:[%s3911_s16 + $0xa8] sm:$0xff] %vm1713_vm3, %v2223_v11 }
 0x1e3   : > { %2239 = vst.msk [vmem:[%s3911_s16 + $0x28] sm:$0xff] %vm1713_vm3, %v2207_v17 }
 0x21a   : > { %v2631_v38 = vpop.f32.mrb[8].mxu1 }
 0x21b   : > { %v2615_v51 = vpop.f32.mrb[8].mxu0  ;;  %v2180_v29 = vadd.f32 %v2631_v38, %v3904_v7  ;;  %v2171_v61 = vpop.f32.mrb[9].mxu1 }
 0x21c   : > { %v2116_v22 = vadd.f32 %v2615_v51, %v3904_v7  ;;  %v2107_v42 = vpop.f32.mrb[9].mxu0  ;;  %v2172_v35 = vadd.f32 %v3904_v7, %v2171_v61  ;;  %v2632_v28 = vpop.f32.mrb[10].mxu1 }
 0x21d   : > { %v2228_v12 = vmax.f32 %v2180_v29, 0.0  ;;  %v2108_v34 = vadd.f32 %v3904_v7, %v2107_v42  ;;  %v2616_v39 = vpop.f32.mrb[10].mxu0  ;;  %v2183_v0 = vadd.f32 %v2632_v28, %v3904_v7  ;;  %v2174_v45 = vpop.f32.mrb[11].mxu1 }
 0x21e   : > { %v2212_v5 = vmax.f32 %v2116_v22, 0.0  ;;  %v2226_v33 = vmax.f32 %v2172_v35, 0.0  ;;  %v2119_v26 = vadd.f32 %v2616_v39, %v3904_v7  ;;  %v2110_v44 = vpop.f32.mrb[11].mxu0  ;;  %v2175_v2 = vadd.f32 %v3904_v7, %v2174_v45 }
 0x21f   : > { %2260 = vst.msk [vmem:[%s3911_s16 + $0xd0] sm:$0xff] %vm1713_vm3, %v2228_v12  ;;  %v2210_v43 = vmax.f32 %v2108_v34, 0.0  ;;  %v2229_v49 = vmax.f32 %v2183_v0, 0.0  ;;  %v2111_v36 = vadd.f32 %v3904_v7, %v2110_v44 }
 0x220   : > { %2244 = vst.msk [vmem:[%s3911_s16 + $0x50] sm:$0xff] %vm1713_vm3, %v2212_v5  ;;  %2258 = vst.msk [vmem:[%s3911_s16 + $0xc0] sm:$0xff] %vm1713_vm3, %v2226_v33  ;;  %v2213_v54 = vmax.f32 %v2119_v26, 0.0  ;;  %v2227_v1 = vmax.f32 %v2175_v2, 0.0 }
 0x221   : > { %2242 = vst.msk [vmem:[%s3911_s16 + $0x40] sm:$0xff] %vm1713_vm3, %v2210_v43  ;;  %2261 = vst.msk [vmem:[%s3911_s16 + $0xd8] sm:$0xff] %vm1713_vm3, %v2229_v49  ;;  %v2211_v63 = vmax.f32 %v2111_v36, 0.0 }
 0x222   : > { %2245 = vst.msk [vmem:[%s3911_s16 + $0x58] sm:$0xff] %vm1713_vm3, %v2213_v54  ;;  %2259 = vst.msk [vmem:[%s3911_s16 + $0xc8] sm:$0xff] %vm1713_vm3, %v2227_v1 }
 0x223   : > { %2243 = vst.msk [vmem:[%s3911_s16 + $0x48] sm:$0xff] %vm1713_vm3, %v2211_v63 }
 0x256   : > { %v2635_v6 = vpop.f32.mrb[12].mxu1 }
 0x257   : > { %v2619_v46 = vpop.f32.mrb[12].mxu0  ;;  %v2196_v50 = vadd.f32 %v2635_v6, %v3904_v7  ;;  %v2187_v13 = vpop.f32.mrb[13].mxu1 }
 0x258   : > { %v2132_v27 = vadd.f32 %v2619_v46, %v3904_v7  ;;  %v2123_v62 = vpop.f32.mrb[13].mxu0  ;;  %v2188_v14 = vadd.f32 %v3904_v7, %v2187_v13  ;;  %v2636_v21 = vpop.f32.mrb[14].mxu1 }
 0x259   : > { %v2232_v15 = vmax.f32 %v2196_v50, 0.0  ;;  %v2124_v52 = vadd.f32 %v3904_v7, %v2123_v62  ;;  %v2620_v48 = vpop.f32.mrb[14].mxu0  ;;  %v2199_v58 = vadd.f32 %v2636_v21, %v3904_v7  ;;  %v2190_v18 = vpop.f32.mrb[15].mxu1 }
 0x25a   : > { %v2216_v41 = vmax.f32 %v2132_v27, 0.0  ;;  %v2230_v59 = vmax.f32 %v2188_v14, 0.0  ;;  %v2135_v10 = vadd.f32 %v2620_v48, %v3904_v7  ;;  %v2126_v30 = vpop.f32.mrb[15].mxu0  ;;  %v2191_v31 = vadd.f32 %v3904_v7, %v2190_v18 }
 0x25b   : > { %2264 = vst.msk [vmem:[%s3911_s16 + $0xf0] sm:$0xff] %vm1713_vm3, %v2232_v15  ;;  %v2214_v16 = vmax.f32 %v2124_v52, 0.0  ;;  %v2233_v57 = vmax.f32 %v2199_v58, 0.0  ;;  %v2127_v60 = vadd.f32 %v3904_v7, %v2126_v30 }
 0x25c   : > { %2248 = vst.msk [vmem:[%s3911_s16 + $0x70] sm:$0xff] %vm1713_vm3, %v2216_v41  ;;  %2262 = vst.msk [vmem:[%s3911_s16 + $0xe0] sm:$0xff] %vm1713_vm3, %v2230_v59  ;;  %v2217_v55 = vmax.f32 %v2135_v10, 0.0  ;;  %v2231_v23 = vmax.f32 %v2191_v31, 0.0 }
 0x25d   : > { %2246 = vst.msk [vmem:[%s3911_s16 + $0x60] sm:$0xff] %vm1713_vm3, %v2214_v16  ;;  %2265 = vst.msk [vmem:[%s3911_s16 + $0xf8] sm:$0xff] %vm1713_vm3, %v2233_v57  ;;  %v2215_v40 = vmax.f32 %v2127_v60, 0.0 }
 0x25e   : > { %2249 = vst.msk [vmem:[%s3911_s16 + $0x78] sm:$0xff] %vm1713_vm3, %v2217_v55  ;;  %2263 = vst.msk [vmem:[%s3911_s16 + $0xe8] sm:$0xff] %vm1713_vm3, %v2231_v23 }
 0x25f   : > { %2247 = vst.msk [vmem:[%s3911_s16 + $0x68] sm:$0xff] %vm1713_vm3, %v2215_v40 }
 0x260 PF: > { %s13_s14 = sadd.s32 1, %s2811_s14   ;;  %s4021_s12 = smov %s2807_s13 }
 0x261   : > { %p10_p5 = scmp.ge.s32.totalorder %s13_s14, 4   ;;  %s4022_s13 = smov %s4024_s15 }
 0x263   :  { %12 = sbr.rel (!%p10_p5) target bundleno = 2 (0x2), region = 65 }

</bundles_post_ra>
